<compile_context>
chip_gen: v7x
topology: tpu7x:2x2x1
jax: 0.10.0
libtpu: 0.0.40
codegen_flags: <defaults>
</compile_context>

<pallas_src>
import jax
import jax.numpy as jnp
from jax import lax
from jax.experimental import pallas as pl
from jax.experimental.pallas import tpu as pltpu


def _layer_norm(x, g, b, eps=1e-5):
    mu = jnp.mean(x, axis=-1, keepdims=True)
    xc = x - mu
    var = jnp.mean(xc * xc, axis=-1, keepdims=True)
    return xc * lax.rsqrt(var + eps) * g + b


def _softmax(s):
    m = jnp.max(s, axis=-1, keepdims=True)
    e = jnp.exp(s - m)
    # EUP approximate reciprocal: frees VALU slots (exp already on EUP).
    return e * pl.reciprocal(jnp.sum(e, axis=-1, keepdims=True), approx=True)


def _make_kernel(n_heads, d_k, d_model, d_ff):
    D = d_model

    def kernel(x_ref, enc_ref, sbias_ref, ebias_ref,
               wqkv1_ref, wo1_ref, wq2_ref, wkv2_ref, wo2_ref,
               w1_ref, w2_ref, vec_ref, out_ref):
        x = x_ref[...]            # (B*Sd, D)  batch folded into sublanes
        enc = enc_ref[...]        # (B*Se, D)
        inv_scale = jnp.float32(1.0 / (d_k ** 0.5))

        # ---- small-vector parameter slab (one DMA, unpacked once) ----------
        bqkv1 = vec_ref[0:1, 0:3 * D]
        bo1 = vec_ref[1:2, 0:D]
        bq2 = vec_ref[2:3, 0:D]
        bkv2 = vec_ref[3:4, 0:2 * D]
        bo2 = vec_ref[4:5, 0:D]
        b1 = vec_ref[5:6, 0:d_ff]
        b2 = vec_ref[6:7, 0:D]
        g1 = vec_ref[7:8, 0:D]
        be1 = vec_ref[8:9, 0:D]
        g2 = vec_ref[9:10, 0:D]
        be2 = vec_ref[10:11, 0:D]
        g3 = vec_ref[11:12, 0:D]
        be3 = vec_ref[12:13, 0:D]

        def mha(q, k, v, wo, bo, bias):
            # q is pre-scaled by 1/sqrt(d_k); `bias` is an f32 additive mask
            # (block-diagonal over the folded batch + user mask positions).
            ps, ctxs = [], []
            for h in range(n_heads):            # static unroll, n_heads small
                lo, hi = h * d_k, (h + 1) * d_k
                # s = q_h @ k_h^T via transposed contraction (no user transpose).
                s = lax.dot_general(q[:, lo:hi], k[:, lo:hi],
                                    (((1,), (1,)), ((), ())),
                                    preferred_element_type=jnp.float32)
                p = _softmax(s + bias)
                ps.append(p)
                ctxs.append(jnp.dot(p, v[:, lo:hi],
                                    preferred_element_type=jnp.float32))
            ctx = jnp.concatenate(ctxs, axis=-1)    # (BSq, D)
            p_slab = jnp.concatenate(ps, axis=-1)   # (BSq, H*BSk) lane-dense
            out = jnp.dot(ctx, wo, preferred_element_type=jnp.float32) + bo
            return out, p_slab

        # ---- masked self-attention (fused QKV) + AddNorm 1 ------------------
        qkv = jnp.dot(x, wqkv1_ref[...],
                      preferred_element_type=jnp.float32) + bqkv1
        q1 = qkv[:, 0:D] * inv_scale
        a1, p1 = mha(q1, qkv[:, D:2 * D], qkv[:, 2 * D:3 * D],
                     wo1_ref[...], bo1, sbias_ref[...])
        h1 = _layer_norm(a1 + x, g1, be1)

        # ---- encoder-decoder attention (fused KV) + AddNorm 2 ---------------
        q2 = (jnp.dot(h1, wq2_ref[...],
                      preferred_element_type=jnp.float32) + bq2) * inv_scale
        kv2 = jnp.dot(enc, wkv2_ref[...],
                      preferred_element_type=jnp.float32) + bkv2
        a2, p2 = mha(q2, kv2[:, 0:D], kv2[:, D:2 * D],
                     wo2_ref[...], bo2, ebias_ref[...])
        h2 = _layer_norm(a2 + h1, g2, be2)

        # ---- position-wise FFN + AddNorm 3 -----------------------------------
        f = jnp.maximum(
            jnp.dot(h2, w1_ref[...], preferred_element_type=jnp.float32) + b1,
            0.0)
        f = jnp.dot(f, w2_ref[...], preferred_element_type=jnp.float32) + b2
        y = _layer_norm(f + h2, g3, be3)

        # Single lane-concatenated store for all three results.
        out_ref[...] = jnp.concatenate([y, p1, p2], axis=-1)
        # Dropout p=0.0 in the reference module -> identity (omitted).

    return kernel


def _pack_params(params, d_model, d_ff):
    """Fuse QKV/KV weights and pack all tiny vectors into one slab."""
    D = d_model
    wqkv1 = jnp.concatenate([params['wq1'], params['wk1'], params['wv1']],
                            axis=1)                               # (D, 3D)
    wkv2 = jnp.concatenate([params['wk2'], params['wv2']], axis=1)  # (D, 2D)

    width = max(3 * D, 2 * D, d_ff, D)

    def row(*vs):
        v = jnp.concatenate([jnp.asarray(x).reshape(-1) for x in vs])
        return jnp.pad(v, (0, width - v.shape[0])).reshape(1, width)

    vec = jnp.concatenate([
        row(params['bq1'], params['bk1'], params['bv1']),   # bqkv1
        row(params['bo1']),
        row(params['bq2']),
        row(params['bk2'], params['bv2']),                  # bkv2
        row(params['bo2']),
        row(params['b1']),
        row(params['b2']),
        row(params['g1']), row(params['be1']),
        row(params['g2']), row(params['be2']),
        row(params['g3']), row(params['be3']),
    ], axis=0).astype(jnp.float32)                          # (13, width)

    return [wqkv1, params['wo1'], params['wq2'], wkv2, params['wo2'],
            params['w1'], params['w2'], vec]


def _fold_bias(mask, B, Sq, Sk):
    """Additive f32 bias for the batch-folded score matrix (B*Sq, B*Sk).

    -1e9 at user-masked positions AND at cross-batch positions so that the
    folded softmax equals the per-batch softmax exactly (masked exps underflow
    to 0 in f32)."""
    same = jnp.arange(B)[:, None] == jnp.arange(B)[None, :]        # (B, B)
    within = jnp.where(mask != 0, jnp.float32(-1e9), jnp.float32(0.0))
    bias = jnp.where(same[:, None, :, None],
                     within[:, :, None, :],
                     jnp.float32(-1e9))                            # (B,Sq,B,Sk)
    return bias.reshape(B * Sq, B * Sk)


def decoder_layer(dec, enc, smask, emask, params, n_heads):
    B, Sd, D = dec.shape
    Se = enc.shape[1]
    H = n_heads
    d_k = D // n_heads
    d_ff = params['w1'].shape[1]
    BSd, BSe = B * Sd, B * Se

    weights = _pack_params(params, D, d_ff)
    x2d = dec.reshape(BSd, D)
    enc2d = enc.reshape(BSe, D)
    sbias = _fold_bias(smask, B, Sd, Sd)
    ebias = _fold_bias(emask, B, Sd, Se)

    W_out = D + H * BSd + H * BSe
    inputs = [x2d, enc2d, sbias, ebias] + weights

    def full_spec(shape):
        nd = len(shape)
        return pl.BlockSpec(shape, lambda i, _nd=nd: (0,) * _nd)

    slab = pl.pallas_call(
        _make_kernel(n_heads, d_k, D, d_ff),
        out_shape=jax.ShapeDtypeStruct((BSd, W_out), jnp.float32),
        grid=(1,),                                   # single grid step
        in_specs=[full_spec(a.shape) for a in inputs],
        out_specs=pl.BlockSpec((BSd, W_out), lambda i: (0, 0)),
        compiler_params=pltpu.CompilerParams(
            dimension_semantics=("arbitrary",)),
    )(*inputs)

    # Restore PyTorch layouts outside the kernel (cheap XLA ops).
    out = slab[:, 0:D].reshape(B, Sd, D)
    p1 = slab[:, D:D + H * BSd].reshape(B, Sd, H, B, Sd)
    p2 = slab[:, D + H * BSd:].reshape(B, Sd, H, B, Se)
    idx = jnp.arange(B)
    sattn = p1[idx, :, :, idx, :].transpose(0, 2, 1, 3)   # (B, H, Sd, Sd)
    eattn = p2[idx, :, :, idx, :].transpose(0, 2, 1, 3)   # (B, H, Sd, Se)
    return out, sattn, eattn


# ----------------------------- reference (plain JAX) -------------------------

def reference(dec, enc, smask, emask, p, n_heads):
    D = dec.shape[-1]
    d_k = D // n_heads

    def ln(x, g, b):
        mu = x.mean(-1, keepdims=True)
        var = ((x - mu) ** 2).mean(-1, keepdims=True)
        return (x - mu) / jnp.sqrt(var + 1e-5) * g + b

    def mha(xq, xkv, wq, bq, wk, bk, wv, bv, wo, bo, mask):
        B, Sq, _ = xq.shape
        q = (xq @ wq + bq).reshape(B, Sq, n_heads, d_k).transpose(0, 2, 1, 3)
        k = (xkv @ wk + bk).reshape(B, -1, n_heads, d_k).transpose(0, 2, 1, 3)
        v = (xkv @ wv + bv).reshape(B, -1, n_heads, d_k).transpose(0, 2, 1, 3)
        s = q @ jnp.swapaxes(k, -1, -2) / jnp.sqrt(jnp.float32(d_k))
        s = jnp.where(mask[:, None, :, :] != 0, jnp.float32(-1e9), s)
        a = jax.nn.softmax(s, axis=-1)
        ctx = (a @ v).transpose(0, 2, 1, 3).reshape(B, Sq, D)
        return ctx @ wo + bo, a

    a1, sa = mha(dec, dec, p['wq1'], p['bq1'], p['wk1'], p['bk1'],
                 p['wv1'], p['bv1'], p['wo1'], p['bo1'], smask)
    h1 = ln(a1 + dec, p['g1'], p['be1'])
    a2, ea = mha(h1, enc, p['wq2'], p['bq2'], p['wk2'], p['bk2'],
                 p['wv2'], p['bv2'], p['wo2'], p['bo2'], emask)
    h2 = ln(a2 + h1, p['g2'], p['be2'])
    f = jnp.maximum(h2 @ p['w1'] + p['b1'], 0.0) @ p['w2'] + p['b2']
    return ln(f + h2, p['g3'], p['be3']), sa, ea


# ----------------------------- main ------------------------------------------

if __name__ == "__main__":
    B, Sd, Se = 2, 8, 8
    d_model, n_heads, d_ff = 32, 4, 64

    key = jax.random.PRNGKey(0)
    keys = jax.random.split(key, 32)
    ki = iter(range(32))

    def w(shape, scale=0.05):
        return (scale * jax.random.normal(keys[next(ki)], shape)).astype(jnp.float32)

    params = {}
    for pfx in ('1', '2'):  # two multi-head attention blocks
        for name in ('wq', 'wk', 'wv', 'wo'):
            params[name + pfx] = w((d_model, d_model))
            params['b' + name[1] + pfx] = w((1, d_model))
    params['w1'] = w((d_model, d_ff))
    params['b1'] = w((1, d_ff))
    params['w2'] = w((d_ff, d_model))
    params['b2'] = w((1, d_model))
    for i in ('1', '2', '3'):
        params['g' + i] = jnp.ones((1, d_model), jnp.float32)
        params['be' + i] = jnp.zeros((1, d_model), jnp.float32)

    dec_inputs = jax.random.normal(keys[next(ki)], (B, Sd, d_model), jnp.float32)
    enc_outputs = jax.random.normal(keys[next(ki)], (B, Se, d_model), jnp.float32)

    # causal mask for decoder self-attention (nonzero == masked position)
    causal = (jnp.arange(Sd)[:, None] < jnp.arange(Sd)[None, :]).astype(jnp.int32)
    dec_self_attn_mask = jnp.broadcast_to(causal, (B, Sd, Sd))
    dec_enc_attn_mask = jnp.zeros((B, Sd, Se), jnp.int32)

    out, self_attn, enc_attn = decoder_layer(
        dec_inputs, enc_outputs, dec_self_attn_mask, dec_enc_attn_mask,
        params, n_heads)
    jax.block_until_ready((out, self_attn, enc_attn))

    ref_out, ref_sa, ref_ea = reference(
        dec_inputs, enc_outputs, dec_self_attn_mask, dec_enc_attn_mask,
        params, n_heads)

    assert out.shape == (B, Sd, d_model)
    assert self_attn.shape == (B, n_heads, Sd, Sd)
    assert enc_attn.shape == (B, n_heads, Sd, Se)
    assert jnp.allclose(out, ref_out, atol=2e-3, rtol=2e-3)
    assert jnp.allclose(self_attn, ref_sa, atol=2e-3, rtol=2e-3)
    assert jnp.allclose(enc_attn, ref_ea, atol=2e-3, rtol=2e-3)

    print("KERNEL_OK")
</pallas_src>

<mosaic_0001>
module attributes {stable_mosaic.version = 11 : i64} {
  func.func @kernel(%arg0: i32, %arg1: memref<16x32xf32, #tpu.memory_space<vmem>>, %arg2: memref<16x32xf32, #tpu.memory_space<vmem>>, %arg3: memref<16x16xf32, #tpu.memory_space<vmem>>, %arg4: memref<16x16xf32, #tpu.memory_space<vmem>>, %arg5: memref<32x96xf32, #tpu.memory_space<vmem>>, %arg6: memref<32x32xf32, #tpu.memory_space<vmem>>, %arg7: memref<32x32xf32, #tpu.memory_space<vmem>>, %arg8: memref<32x64xf32, #tpu.memory_space<vmem>>, %arg9: memref<32x32xf32, #tpu.memory_space<vmem>>, %arg10: memref<32x64xf32, #tpu.memory_space<vmem>>, %arg11: memref<64x32xf32, #tpu.memory_space<vmem>>, %arg12: memref<13x96xf32, #tpu.memory_space<vmem>>, %arg13: memref<16x160xf32, #tpu.memory_space<vmem>>) attributes {dimension_semantics = [#tpu.dimension_semantics<arbitrary>], iteration_bounds = array<i64: 1>, scalar_prefetch = 0 : i64, scratch_operands = 0 : i64, tpu.core_type = #tpu.core_type<tc>, window_params = [{pipeline_mode = #tpu.pipeline_mode<synchronous>, transform_indices = @transform_0, window_bounds = array<i64: 16, 32>}, {pipeline_mode = #tpu.pipeline_mode<synchronous>, transform_indices = @transform_1, window_bounds = array<i64: 16, 32>}, {pipeline_mode = #tpu.pipeline_mode<synchronous>, transform_indices = @transform_2, window_bounds = array<i64: 16, 16>}, {pipeline_mode = #tpu.pipeline_mode<synchronous>, transform_indices = @transform_3, window_bounds = array<i64: 16, 16>}, {pipeline_mode = #tpu.pipeline_mode<synchronous>, transform_indices = @transform_4, window_bounds = array<i64: 32, 96>}, {pipeline_mode = #tpu.pipeline_mode<synchronous>, transform_indices = @transform_5, window_bounds = array<i64: 32, 32>}, {pipeline_mode = #tpu.pipeline_mode<synchronous>, transform_indices = @transform_6, window_bounds = array<i64: 32, 32>}, {pipeline_mode = #tpu.pipeline_mode<synchronous>, transform_indices = @transform_7, window_bounds = array<i64: 32, 64>}, {pipeline_mode = #tpu.pipeline_mode<synchronous>, transform_indices = @transform_8, window_bounds = array<i64: 32, 32>}, {pipeline_mode = #tpu.pipeline_mode<synchronous>, transform_indices = @transform_9, window_bounds = array<i64: 32, 64>}, {pipeline_mode = #tpu.pipeline_mode<synchronous>, transform_indices = @transform_10, window_bounds = array<i64: 64, 32>}, {pipeline_mode = #tpu.pipeline_mode<synchronous>, transform_indices = @transform_11, window_bounds = array<i64: 13, 96>}, {pipeline_mode = #tpu.pipeline_mode<synchronous>, transform_indices = @transform_12, window_bounds = array<i64: 16, 160>}]} {
    %c0 = arith.constant 0 : index
    %c0_0 = arith.constant 0 : index
    %0 = vector.load %arg1[%c0, %c0_0] : memref<16x32xf32, #tpu.memory_space<vmem>>, vector<16x32xf32>
    %c0_1 = arith.constant 0 : index
    %c0_2 = arith.constant 0 : index
    %1 = vector.load %arg2[%c0_1, %c0_2] : memref<16x32xf32, #tpu.memory_space<vmem>>, vector<16x32xf32>
    %c0_3 = arith.constant 0 : index
    %c0_4 = arith.constant 0 : index
    %2 = vector.load %arg12[%c0_3, %c0_4] : memref<13x96xf32, #tpu.memory_space<vmem>>, vector<1x96xf32>
    %c1 = arith.constant 1 : index
    %c0_5 = arith.constant 0 : index
    %3 = vector.load %arg12[%c1, %c0_5] : memref<13x96xf32, #tpu.memory_space<vmem>>, vector<1x32xf32>
    %c2 = arith.constant 2 : index
    %c0_6 = arith.constant 0 : index
    %4 = vector.load %arg12[%c2, %c0_6] : memref<13x96xf32, #tpu.memory_space<vmem>>, vector<1x32xf32>
    %c3 = arith.constant 3 : index
    %c0_7 = arith.constant 0 : index
    %5 = vector.load %arg12[%c3, %c0_7] : memref<13x96xf32, #tpu.memory_space<vmem>>, vector<1x64xf32>
    %c4 = arith.constant 4 : index
    %c0_8 = arith.constant 0 : index
    %6 = vector.load %arg12[%c4, %c0_8] : memref<13x96xf32, #tpu.memory_space<vmem>>, vector<1x32xf32>
    %c5 = arith.constant 5 : index
    %c0_9 = arith.constant 0 : index
    %7 = vector.load %arg12[%c5, %c0_9] : memref<13x96xf32, #tpu.memory_space<vmem>>, vector<1x64xf32>
    %c6 = arith.constant 6 : index
    %c0_10 = arith.constant 0 : index
    %8 = vector.load %arg12[%c6, %c0_10] : memref<13x96xf32, #tpu.memory_space<vmem>>, vector<1x32xf32>
    %c7 = arith.constant 7 : index
    %c0_11 = arith.constant 0 : index
    %9 = vector.load %arg12[%c7, %c0_11] : memref<13x96xf32, #tpu.memory_space<vmem>>, vector<1x32xf32>
    %c8 = arith.constant 8 : index
    %c0_12 = arith.constant 0 : index
    %10 = vector.load %arg12[%c8, %c0_12] : memref<13x96xf32, #tpu.memory_space<vmem>>, vector<1x32xf32>
    %c9 = arith.constant 9 : index
    %c0_13 = arith.constant 0 : index
    %11 = vector.load %arg12[%c9, %c0_13] : memref<13x96xf32, #tpu.memory_space<vmem>>, vector<1x32xf32>
    %c10 = arith.constant 10 : index
    %c0_14 = arith.constant 0 : index
    %12 = vector.load %arg12[%c10, %c0_14] : memref<13x96xf32, #tpu.memory_space<vmem>>, vector<1x32xf32>
    %c11 = arith.constant 11 : index
    %c0_15 = arith.constant 0 : index
    %13 = vector.load %arg12[%c11, %c0_15] : memref<13x96xf32, #tpu.memory_space<vmem>>, vector<1x32xf32>
    %c12 = arith.constant 12 : index
    %c0_16 = arith.constant 0 : index
    %14 = vector.load %arg12[%c12, %c0_16] : memref<13x96xf32, #tpu.memory_space<vmem>>, vector<1x32xf32>
    %c0_17 = arith.constant 0 : index
    %c0_18 = arith.constant 0 : index
    %15 = vector.load %arg5[%c0_17, %c0_18] : memref<32x96xf32, #tpu.memory_space<vmem>>, vector<32x96xf32>
    %cst = arith.constant dense<0.000000e+00> : vector<16x96xf32>
    %16 = tpu.matmul %0, %15, %cst {dimension_numbers = #tpu.dot_dimension_numbers<[1], [0], [0], [1], [0, 0, 1, 1], [], []>} : vector<16x32xf32>, vector<32x96xf32>, vector<16x96xf32> -> vector<16x96xf32>
    %17 = vector.broadcast %2 : vector<1x96xf32> to vector<16x96xf32>
    %18 = arith.addf %16, %17 : vector<16x96xf32>
    %19 = vector.extract_strided_slice %18 {offsets = [0, 0], sizes = [16, 32], strides = [1, 1]} : vector<16x96xf32> to vector<16x32xf32>
    %cst_19 = arith.constant 0.353553385 : f32
    %20 = vector.broadcast %cst_19 : f32 to vector<16x32xf32>
    %21 = arith.mulf %19, %20 : vector<16x32xf32>
    %22 = vector.extract_strided_slice %18 {offsets = [0, 32], sizes = [16, 32], strides = [1, 1]} : vector<16x96xf32> to vector<16x32xf32>
    %23 = vector.extract_strided_slice %18 {offsets = [0, 64], sizes = [16, 32], strides = [1, 1]} : vector<16x96xf32> to vector<16x32xf32>
    %c0_20 = arith.constant 0 : index
    %c0_21 = arith.constant 0 : index
    %24 = vector.load %arg6[%c0_20, %c0_21] : memref<32x32xf32, #tpu.memory_space<vmem>>, vector<32x32xf32>
    %c0_22 = arith.constant 0 : index
    %c0_23 = arith.constant 0 : index
    %25 = vector.load %arg3[%c0_22, %c0_23] : memref<16x16xf32, #tpu.memory_space<vmem>>, vector<16x16xf32>
    %26 = vector.extract_strided_slice %21 {offsets = [0, 0], sizes = [16, 8], strides = [1, 1]} : vector<16x32xf32> to vector<16x8xf32>
    %27 = vector.extract_strided_slice %22 {offsets = [0, 0], sizes = [16, 8], strides = [1, 1]} : vector<16x32xf32> to vector<16x8xf32>
    %cst_24 = arith.constant dense<0.000000e+00> : vector<16x16xf32>
    %28 = tpu.matmul %26, %27, %cst_24 {dimension_numbers = #tpu.dot_dimension_numbers<[1], [1], [0], [0], [0, 0, 1, 0], [], []>} : vector<16x8xf32>, vector<16x8xf32>, vector<16x16xf32> -> vector<16x16xf32>
    %29 = arith.addf %28, %25 : vector<16x16xf32>
    %cst_25 = arith.constant dense<0xFF800000> : vector<16xf32>
    %30 = vector.multi_reduction <maximumf>, %29, %cst_25 [1] : vector<16x16xf32> to vector<16xf32>
    %31 = vector.shape_cast %30 : vector<16xf32> to vector<16x1xf32>
    %32 = vector.broadcast %31 : vector<16x1xf32> to vector<16x16xf32>
    %33 = arith.subf %29, %32 : vector<16x16xf32>
    %34 = math.exp %33 : vector<16x16xf32>
    %cst_26 = arith.constant dense<0.000000e+00> : vector<16xf32>
    %35 = vector.multi_reduction <add>, %34, %cst_26 [1] : vector<16x16xf32> to vector<16xf32>
    %36 = vector.shape_cast %35 : vector<16xf32> to vector<16x1xf32>
    %37 = tpu.reciprocal %36 {approx = true} : vector<16x1xf32> -> vector<16x1xf32>
    %38 = vector.broadcast %37 : vector<16x1xf32> to vector<16x16xf32>
    %39 = arith.mulf %34, %38 : vector<16x16xf32>
    %40 = vector.extract_strided_slice %23 {offsets = [0, 0], sizes = [16, 8], strides = [1, 1]} : vector<16x32xf32> to vector<16x8xf32>
    %cst_27 = arith.constant dense<0.000000e+00> : vector<16x8xf32>
    %41 = tpu.matmul %39, %40, %cst_27 {dimension_numbers = #tpu.dot_dimension_numbers<[1], [0], [0], [1], [0, 0, 1, 1], [], []>} : vector<16x16xf32>, vector<16x8xf32>, vector<16x8xf32> -> vector<16x8xf32>
    %42 = vector.extract_strided_slice %21 {offsets = [0, 8], sizes = [16, 8], strides = [1, 1]} : vector<16x32xf32> to vector<16x8xf32>
    %43 = vector.extract_strided_slice %22 {offsets = [0, 8], sizes = [16, 8], strides = [1, 1]} : vector<16x32xf32> to vector<16x8xf32>
    %cst_28 = arith.constant dense<0.000000e+00> : vector<16x16xf32>
    %44 = tpu.matmul %42, %43, %cst_28 {dimension_numbers = #tpu.dot_dimension_numbers<[1], [1], [0], [0], [0, 0, 1, 0], [], []>} : vector<16x8xf32>, vector<16x8xf32>, vector<16x16xf32> -> vector<16x16xf32>
    %45 = arith.addf %44, %25 : vector<16x16xf32>
    %cst_29 = arith.constant dense<0xFF800000> : vector<16xf32>
    %46 = vector.multi_reduction <maximumf>, %45, %cst_29 [1] : vector<16x16xf32> to vector<16xf32>
    %47 = vector.shape_cast %46 : vector<16xf32> to vector<16x1xf32>
    %48 = vector.broadcast %47 : vector<16x1xf32> to vector<16x16xf32>
    %49 = arith.subf %45, %48 : vector<16x16xf32>
    %50 = math.exp %49 : vector<16x16xf32>
    %cst_30 = arith.constant dense<0.000000e+00> : vector<16xf32>
    %51 = vector.multi_reduction <add>, %50, %cst_30 [1] : vector<16x16xf32> to vector<16xf32>
    %52 = vector.shape_cast %51 : vector<16xf32> to vector<16x1xf32>
    %53 = tpu.reciprocal %52 {approx = true} : vector<16x1xf32> -> vector<16x1xf32>
    %54 = vector.broadcast %53 : vector<16x1xf32> to vector<16x16xf32>
    %55 = arith.mulf %50, %54 : vector<16x16xf32>
    %56 = vector.extract_strided_slice %23 {offsets = [0, 8], sizes = [16, 8], strides = [1, 1]} : vector<16x32xf32> to vector<16x8xf32>
    %cst_31 = arith.constant dense<0.000000e+00> : vector<16x8xf32>
    %57 = tpu.matmul %55, %56, %cst_31 {dimension_numbers = #tpu.dot_dimension_numbers<[1], [0], [0], [1], [0, 0, 1, 1], [], []>} : vector<16x16xf32>, vector<16x8xf32>, vector<16x8xf32> -> vector<16x8xf32>
    %58 = vector.extract_strided_slice %21 {offsets = [0, 16], sizes = [16, 8], strides = [1, 1]} : vector<16x32xf32> to vector<16x8xf32>
    %59 = vector.extract_strided_slice %22 {offsets = [0, 16], sizes = [16, 8], strides = [1, 1]} : vector<16x32xf32> to vector<16x8xf32>
    %cst_32 = arith.constant dense<0.000000e+00> : vector<16x16xf32>
    %60 = tpu.matmul %58, %59, %cst_32 {dimension_numbers = #tpu.dot_dimension_numbers<[1], [1], [0], [0], [0, 0, 1, 0], [], []>} : vector<16x8xf32>, vector<16x8xf32>, vector<16x16xf32> -> vector<16x16xf32>
    %61 = arith.addf %60, %25 : vector<16x16xf32>
    %cst_33 = arith.constant dense<0xFF800000> : vector<16xf32>
    %62 = vector.multi_reduction <maximumf>, %61, %cst_33 [1] : vector<16x16xf32> to vector<16xf32>
    %63 = vector.shape_cast %62 : vector<16xf32> to vector<16x1xf32>
    %64 = vector.broadcast %63 : vector<16x1xf32> to vector<16x16xf32>
    %65 = arith.subf %61, %64 : vector<16x16xf32>
    %66 = math.exp %65 : vector<16x16xf32>
    %cst_34 = arith.constant dense<0.000000e+00> : vector<16xf32>
    %67 = vector.multi_reduction <add>, %66, %cst_34 [1] : vector<16x16xf32> to vector<16xf32>
    %68 = vector.shape_cast %67 : vector<16xf32> to vector<16x1xf32>
    %69 = tpu.reciprocal %68 {approx = true} : vector<16x1xf32> -> vector<16x1xf32>
    %70 = vector.broadcast %69 : vector<16x1xf32> to vector<16x16xf32>
    %71 = arith.mulf %66, %70 : vector<16x16xf32>
    %72 = vector.extract_strided_slice %23 {offsets = [0, 16], sizes = [16, 8], strides = [1, 1]} : vector<16x32xf32> to vector<16x8xf32>
    %cst_35 = arith.constant dense<0.000000e+00> : vector<16x8xf32>
    %73 = tpu.matmul %71, %72, %cst_35 {dimension_numbers = #tpu.dot_dimension_numbers<[1], [0], [0], [1], [0, 0, 1, 1], [], []>} : vector<16x16xf32>, vector<16x8xf32>, vector<16x8xf32> -> vector<16x8xf32>
    %74 = vector.extract_strided_slice %21 {offsets = [0, 24], sizes = [16, 8], strides = [1, 1]} : vector<16x32xf32> to vector<16x8xf32>
    %75 = vector.extract_strided_slice %22 {offsets = [0, 24], sizes = [16, 8], strides = [1, 1]} : vector<16x32xf32> to vector<16x8xf32>
    %cst_36 = arith.constant dense<0.000000e+00> : vector<16x16xf32>
    %76 = tpu.matmul %74, %75, %cst_36 {dimension_numbers = #tpu.dot_dimension_numbers<[1], [1], [0], [0], [0, 0, 1, 0], [], []>} : vector<16x8xf32>, vector<16x8xf32>, vector<16x16xf32> -> vector<16x16xf32>
    %77 = arith.addf %76, %25 : vector<16x16xf32>
    %cst_37 = arith.constant dense<0xFF800000> : vector<16xf32>
    %78 = vector.multi_reduction <maximumf>, %77, %cst_37 [1] : vector<16x16xf32> to vector<16xf32>
    %79 = vector.shape_cast %78 : vector<16xf32> to vector<16x1xf32>
    %80 = vector.broadcast %79 : vector<16x1xf32> to vector<16x16xf32>
    %81 = arith.subf %77, %80 : vector<16x16xf32>
    %82 = math.exp %81 : vector<16x16xf32>
    %cst_38 = arith.constant dense<0.000000e+00> : vector<16xf32>
    %83 = vector.multi_reduction <add>, %82, %cst_38 [1] : vector<16x16xf32> to vector<16xf32>
    %84 = vector.shape_cast %83 : vector<16xf32> to vector<16x1xf32>
    %85 = tpu.reciprocal %84 {approx = true} : vector<16x1xf32> -> vector<16x1xf32>
    %86 = vector.broadcast %85 : vector<16x1xf32> to vector<16x16xf32>
    %87 = arith.mulf %82, %86 : vector<16x16xf32>
    %88 = vector.extract_strided_slice %23 {offsets = [0, 24], sizes = [16, 8], strides = [1, 1]} : vector<16x32xf32> to vector<16x8xf32>
    %cst_39 = arith.constant dense<0.000000e+00> : vector<16x8xf32>
    %89 = tpu.matmul %87, %88, %cst_39 {dimension_numbers = #tpu.dot_dimension_numbers<[1], [0], [0], [1], [0, 0, 1, 1], [], []>} : vector<16x16xf32>, vector<16x8xf32>, vector<16x8xf32> -> vector<16x8xf32>
    %90 = tpu.concatenate %41, %57, %73, %89 in 1 : vector<16x8xf32>, vector<16x8xf32>, vector<16x8xf32>, vector<16x8xf32> -> vector<16x32xf32>
    %91 = tpu.concatenate %39, %55, %71, %87 in 1 : vector<16x16xf32>, vector<16x16xf32>, vector<16x16xf32>, vector<16x16xf32> -> vector<16x64xf32>
    %cst_40 = arith.constant dense<0.000000e+00> : vector<16x32xf32>
    %92 = tpu.matmul %90, %24, %cst_40 {dimension_numbers = #tpu.dot_dimension_numbers<[1], [0], [0], [1], [0, 0, 1, 1], [], []>} : vector<16x32xf32>, vector<32x32xf32>, vector<16x32xf32> -> vector<16x32xf32>
    %93 = vector.broadcast %3 : vector<1x32xf32> to vector<16x32xf32>
    %94 = arith.addf %92, %93 : vector<16x32xf32>
    %95 = arith.addf %94, %0 : vector<16x32xf32>
    %cst_41 = arith.constant dense<0.000000e+00> : vector<16xf32>
    %96 = vector.multi_reduction <add>, %95, %cst_41 [1] : vector<16x32xf32> to vector<16xf32>
    %97 = vector.shape_cast %96 : vector<16xf32> to vector<16x1xf32>
    %cst_42 = arith.constant 3.200000e+01 : f32
    %98 = vector.broadcast %cst_42 : f32 to vector<16x1xf32>
    %99 = arith.divf %97, %98 : vector<16x1xf32>
    %100 = vector.broadcast %99 : vector<16x1xf32> to vector<16x32xf32>
    %101 = arith.subf %95, %100 : vector<16x32xf32>
    %102 = arith.mulf %101, %101 : vector<16x32xf32>
    %cst_43 = arith.constant dense<0.000000e+00> : vector<16xf32>
    %103 = vector.multi_reduction <add>, %102, %cst_43 [1] : vector<16x32xf32> to vector<16xf32>
    %104 = vector.shape_cast %103 : vector<16xf32> to vector<16x1xf32>
    %cst_44 = arith.constant 3.200000e+01 : f32
    %105 = vector.broadcast %cst_44 : f32 to vector<16x1xf32>
    %106 = arith.divf %104, %105 : vector<16x1xf32>
    %cst_45 = arith.constant 9.99999974E-6 : f32
    %107 = vector.broadcast %cst_45 : f32 to vector<16x1xf32>
    %108 = arith.addf %106, %107 : vector<16x1xf32>
    %109 = math.rsqrt %108 : vector<16x1xf32>
    %110 = vector.broadcast %109 : vector<16x1xf32> to vector<16x32xf32>
    %111 = arith.mulf %101, %110 : vector<16x32xf32>
    %112 = vector.broadcast %9 : vector<1x32xf32> to vector<16x32xf32>
    %113 = arith.mulf %111, %112 : vector<16x32xf32>
    %114 = vector.broadcast %10 : vector<1x32xf32> to vector<16x32xf32>
    %115 = arith.addf %113, %114 : vector<16x32xf32>
    %c0_46 = arith.constant 0 : index
    %c0_47 = arith.constant 0 : index
    %116 = vector.load %arg7[%c0_46, %c0_47] : memref<32x32xf32, #tpu.memory_space<vmem>>, vector<32x32xf32>
    %cst_48 = arith.constant dense<0.000000e+00> : vector<16x32xf32>
    %117 = tpu.matmul %115, %116, %cst_48 {dimension_numbers = #tpu.dot_dimension_numbers<[1], [0], [0], [1], [0, 0, 1, 1], [], []>} : vector<16x32xf32>, vector<32x32xf32>, vector<16x32xf32> -> vector<16x32xf32>
    %118 = vector.broadcast %4 : vector<1x32xf32> to vector<16x32xf32>
    %119 = arith.addf %117, %118 : vector<16x32xf32>
    %cst_49 = arith.constant 0.353553385 : f32
    %120 = vector.broadcast %cst_49 : f32 to vector<16x32xf32>
    %121 = arith.mulf %119, %120 : vector<16x32xf32>
    %c0_50 = arith.constant 0 : index
    %c0_51 = arith.constant 0 : index
    %122 = vector.load %arg8[%c0_50, %c0_51] : memref<32x64xf32, #tpu.memory_space<vmem>>, vector<32x64xf32>
    %cst_52 = arith.constant dense<0.000000e+00> : vector<16x64xf32>
    %123 = tpu.matmul %1, %122, %cst_52 {dimension_numbers = #tpu.dot_dimension_numbers<[1], [0], [0], [1], [0, 0, 1, 1], [], []>} : vector<16x32xf32>, vector<32x64xf32>, vector<16x64xf32> -> vector<16x64xf32>
    %124 = vector.broadcast %5 : vector<1x64xf32> to vector<16x64xf32>
    %125 = arith.addf %123, %124 : vector<16x64xf32>
    %126 = vector.extract_strided_slice %125 {offsets = [0, 0], sizes = [16, 32], strides = [1, 1]} : vector<16x64xf32> to vector<16x32xf32>
    %127 = vector.extract_strided_slice %125 {offsets = [0, 32], sizes = [16, 32], strides = [1, 1]} : vector<16x64xf32> to vector<16x32xf32>
    %c0_53 = arith.constant 0 : index
    %c0_54 = arith.constant 0 : index
    %128 = vector.load %arg9[%c0_53, %c0_54] : memref<32x32xf32, #tpu.memory_space<vmem>>, vector<32x32xf32>
    %c0_55 = arith.constant 0 : index
    %c0_56 = arith.constant 0 : index
    %129 = vector.load %arg4[%c0_55, %c0_56] : memref<16x16xf32, #tpu.memory_space<vmem>>, vector<16x16xf32>
    %130 = vector.extract_strided_slice %121 {offsets = [0, 0], sizes = [16, 8], strides = [1, 1]} : vector<16x32xf32> to vector<16x8xf32>
    %131 = vector.extract_strided_slice %126 {offsets = [0, 0], sizes = [16, 8], strides = [1, 1]} : vector<16x32xf32> to vector<16x8xf32>
    %cst_57 = arith.constant dense<0.000000e+00> : vector<16x16xf32>
    %132 = tpu.matmul %130, %131, %cst_57 {dimension_numbers = #tpu.dot_dimension_numbers<[1], [1], [0], [0], [0, 0, 1, 0], [], []>} : vector<16x8xf32>, vector<16x8xf32>, vector<16x16xf32> -> vector<16x16xf32>
    %133 = arith.addf %132, %129 : vector<16x16xf32>
    %cst_58 = arith.constant dense<0xFF800000> : vector<16xf32>
    %134 = vector.multi_reduction <maximumf>, %133, %cst_58 [1] : vector<16x16xf32> to vector<16xf32>
    %135 = vector.shape_cast %134 : vector<16xf32> to vector<16x1xf32>
    %136 = vector.broadcast %135 : vector<16x1xf32> to vector<16x16xf32>
    %137 = arith.subf %133, %136 : vector<16x16xf32>
    %138 = math.exp %137 : vector<16x16xf32>
    %cst_59 = arith.constant dense<0.000000e+00> : vector<16xf32>
    %139 = vector.multi_reduction <add>, %138, %cst_59 [1] : vector<16x16xf32> to vector<16xf32>
    %140 = vector.shape_cast %139 : vector<16xf32> to vector<16x1xf32>
    %141 = tpu.reciprocal %140 {approx = true} : vector<16x1xf32> -> vector<16x1xf32>
    %142 = vector.broadcast %141 : vector<16x1xf32> to vector<16x16xf32>
    %143 = arith.mulf %138, %142 : vector<16x16xf32>
    %144 = vector.extract_strided_slice %127 {offsets = [0, 0], sizes = [16, 8], strides = [1, 1]} : vector<16x32xf32> to vector<16x8xf32>
    %cst_60 = arith.constant dense<0.000000e+00> : vector<16x8xf32>
    %145 = tpu.matmul %143, %144, %cst_60 {dimension_numbers = #tpu.dot_dimension_numbers<[1], [0], [0], [1], [0, 0, 1, 1], [], []>} : vector<16x16xf32>, vector<16x8xf32>, vector<16x8xf32> -> vector<16x8xf32>
    %146 = vector.extract_strided_slice %121 {offsets = [0, 8], sizes = [16, 8], strides = [1, 1]} : vector<16x32xf32> to vector<16x8xf32>
    %147 = vector.extract_strided_slice %126 {offsets = [0, 8], sizes = [16, 8], strides = [1, 1]} : vector<16x32xf32> to vector<16x8xf32>
    %cst_61 = arith.constant dense<0.000000e+00> : vector<16x16xf32>
    %148 = tpu.matmul %146, %147, %cst_61 {dimension_numbers = #tpu.dot_dimension_numbers<[1], [1], [0], [0], [0, 0, 1, 0], [], []>} : vector<16x8xf32>, vector<16x8xf32>, vector<16x16xf32> -> vector<16x16xf32>
    %149 = arith.addf %148, %129 : vector<16x16xf32>
    %cst_62 = arith.constant dense<0xFF800000> : vector<16xf32>
    %150 = vector.multi_reduction <maximumf>, %149, %cst_62 [1] : vector<16x16xf32> to vector<16xf32>
    %151 = vector.shape_cast %150 : vector<16xf32> to vector<16x1xf32>
    %152 = vector.broadcast %151 : vector<16x1xf32> to vector<16x16xf32>
    %153 = arith.subf %149, %152 : vector<16x16xf32>
    %154 = math.exp %153 : vector<16x16xf32>
    %cst_63 = arith.constant dense<0.000000e+00> : vector<16xf32>
    %155 = vector.multi_reduction <add>, %154, %cst_63 [1] : vector<16x16xf32> to vector<16xf32>
    %156 = vector.shape_cast %155 : vector<16xf32> to vector<16x1xf32>
    %157 = tpu.reciprocal %156 {approx = true} : vector<16x1xf32> -> vector<16x1xf32>
    %158 = vector.broadcast %157 : vector<16x1xf32> to vector<16x16xf32>
    %159 = arith.mulf %154, %158 : vector<16x16xf32>
    %160 = vector.extract_strided_slice %127 {offsets = [0, 8], sizes = [16, 8], strides = [1, 1]} : vector<16x32xf32> to vector<16x8xf32>
    %cst_64 = arith.constant dense<0.000000e+00> : vector<16x8xf32>
    %161 = tpu.matmul %159, %160, %cst_64 {dimension_numbers = #tpu.dot_dimension_numbers<[1], [0], [0], [1], [0, 0, 1, 1], [], []>} : vector<16x16xf32>, vector<16x8xf32>, vector<16x8xf32> -> vector<16x8xf32>
    %162 = vector.extract_strided_slice %121 {offsets = [0, 16], sizes = [16, 8], strides = [1, 1]} : vector<16x32xf32> to vector<16x8xf32>
    %163 = vector.extract_strided_slice %126 {offsets = [0, 16], sizes = [16, 8], strides = [1, 1]} : vector<16x32xf32> to vector<16x8xf32>
    %cst_65 = arith.constant dense<0.000000e+00> : vector<16x16xf32>
    %164 = tpu.matmul %162, %163, %cst_65 {dimension_numbers = #tpu.dot_dimension_numbers<[1], [1], [0], [0], [0, 0, 1, 0], [], []>} : vector<16x8xf32>, vector<16x8xf32>, vector<16x16xf32> -> vector<16x16xf32>
    %165 = arith.addf %164, %129 : vector<16x16xf32>
    %cst_66 = arith.constant dense<0xFF800000> : vector<16xf32>
    %166 = vector.multi_reduction <maximumf>, %165, %cst_66 [1] : vector<16x16xf32> to vector<16xf32>
    %167 = vector.shape_cast %166 : vector<16xf32> to vector<16x1xf32>
    %168 = vector.broadcast %167 : vector<16x1xf32> to vector<16x16xf32>
    %169 = arith.subf %165, %168 : vector<16x16xf32>
    %170 = math.exp %169 : vector<16x16xf32>
    %cst_67 = arith.constant dense<0.000000e+00> : vector<16xf32>
    %171 = vector.multi_reduction <add>, %170, %cst_67 [1] : vector<16x16xf32> to vector<16xf32>
    %172 = vector.shape_cast %171 : vector<16xf32> to vector<16x1xf32>
    %173 = tpu.reciprocal %172 {approx = true} : vector<16x1xf32> -> vector<16x1xf32>
    %174 = vector.broadcast %173 : vector<16x1xf32> to vector<16x16xf32>
    %175 = arith.mulf %170, %174 : vector<16x16xf32>
    %176 = vector.extract_strided_slice %127 {offsets = [0, 16], sizes = [16, 8], strides = [1, 1]} : vector<16x32xf32> to vector<16x8xf32>
    %cst_68 = arith.constant dense<0.000000e+00> : vector<16x8xf32>
    %177 = tpu.matmul %175, %176, %cst_68 {dimension_numbers = #tpu.dot_dimension_numbers<[1], [0], [0], [1], [0, 0, 1, 1], [], []>} : vector<16x16xf32>, vector<16x8xf32>, vector<16x8xf32> -> vector<16x8xf32>
    %178 = vector.extract_strided_slice %121 {offsets = [0, 24], sizes = [16, 8], strides = [1, 1]} : vector<16x32xf32> to vector<16x8xf32>
    %179 = vector.extract_strided_slice %126 {offsets = [0, 24], sizes = [16, 8], strides = [1, 1]} : vector<16x32xf32> to vector<16x8xf32>
    %cst_69 = arith.constant dense<0.000000e+00> : vector<16x16xf32>
    %180 = tpu.matmul %178, %179, %cst_69 {dimension_numbers = #tpu.dot_dimension_numbers<[1], [1], [0], [0], [0, 0, 1, 0], [], []>} : vector<16x8xf32>, vector<16x8xf32>, vector<16x16xf32> -> vector<16x16xf32>
    %181 = arith.addf %180, %129 : vector<16x16xf32>
    %cst_70 = arith.constant dense<0xFF800000> : vector<16xf32>
    %182 = vector.multi_reduction <maximumf>, %181, %cst_70 [1] : vector<16x16xf32> to vector<16xf32>
    %183 = vector.shape_cast %182 : vector<16xf32> to vector<16x1xf32>
    %184 = vector.broadcast %183 : vector<16x1xf32> to vector<16x16xf32>
    %185 = arith.subf %181, %184 : vector<16x16xf32>
    %186 = math.exp %185 : vector<16x16xf32>
    %cst_71 = arith.constant dense<0.000000e+00> : vector<16xf32>
    %187 = vector.multi_reduction <add>, %186, %cst_71 [1] : vector<16x16xf32> to vector<16xf32>
    %188 = vector.shape_cast %187 : vector<16xf32> to vector<16x1xf32>
    %189 = tpu.reciprocal %188 {approx = true} : vector<16x1xf32> -> vector<16x1xf32>
    %190 = vector.broadcast %189 : vector<16x1xf32> to vector<16x16xf32>
    %191 = arith.mulf %186, %190 : vector<16x16xf32>
    %192 = vector.extract_strided_slice %127 {offsets = [0, 24], sizes = [16, 8], strides = [1, 1]} : vector<16x32xf32> to vector<16x8xf32>
    %cst_72 = arith.constant dense<0.000000e+00> : vector<16x8xf32>
    %193 = tpu.matmul %191, %192, %cst_72 {dimension_numbers = #tpu.dot_dimension_numbers<[1], [0], [0], [1], [0, 0, 1, 1], [], []>} : vector<16x16xf32>, vector<16x8xf32>, vector<16x8xf32> -> vector<16x8xf32>
    %194 = tpu.concatenate %145, %161, %177, %193 in 1 : vector<16x8xf32>, vector<16x8xf32>, vector<16x8xf32>, vector<16x8xf32> -> vector<16x32xf32>
    %195 = tpu.concatenate %143, %159, %175, %191 in 1 : vector<16x16xf32>, vector<16x16xf32>, vector<16x16xf32>, vector<16x16xf32> -> vector<16x64xf32>
    %cst_73 = arith.constant dense<0.000000e+00> : vector<16x32xf32>
    %196 = tpu.matmul %194, %128, %cst_73 {dimension_numbers = #tpu.dot_dimension_numbers<[1], [0], [0], [1], [0, 0, 1, 1], [], []>} : vector<16x32xf32>, vector<32x32xf32>, vector<16x32xf32> -> vector<16x32xf32>
    %197 = vector.broadcast %6 : vector<1x32xf32> to vector<16x32xf32>
    %198 = arith.addf %196, %197 : vector<16x32xf32>
    %199 = arith.addf %198, %115 : vector<16x32xf32>
    %cst_74 = arith.constant dense<0.000000e+00> : vector<16xf32>
    %200 = vector.multi_reduction <add>, %199, %cst_74 [1] : vector<16x32xf32> to vector<16xf32>
    %201 = vector.shape_cast %200 : vector<16xf32> to vector<16x1xf32>
    %cst_75 = arith.constant 3.200000e+01 : f32
    %202 = vector.broadcast %cst_75 : f32 to vector<16x1xf32>
    %203 = arith.divf %201, %202 : vector<16x1xf32>
    %204 = vector.broadcast %203 : vector<16x1xf32> to vector<16x32xf32>
    %205 = arith.subf %199, %204 : vector<16x32xf32>
    %206 = arith.mulf %205, %205 : vector<16x32xf32>
    %cst_76 = arith.constant dense<0.000000e+00> : vector<16xf32>
    %207 = vector.multi_reduction <add>, %206, %cst_76 [1] : vector<16x32xf32> to vector<16xf32>
    %208 = vector.shape_cast %207 : vector<16xf32> to vector<16x1xf32>
    %cst_77 = arith.constant 3.200000e+01 : f32
    %209 = vector.broadcast %cst_77 : f32 to vector<16x1xf32>
    %210 = arith.divf %208, %209 : vector<16x1xf32>
    %cst_78 = arith.constant 9.99999974E-6 : f32
    %211 = vector.broadcast %cst_78 : f32 to vector<16x1xf32>
    %212 = arith.addf %210, %211 : vector<16x1xf32>
    %213 = math.rsqrt %212 : vector<16x1xf32>
    %214 = vector.broadcast %213 : vector<16x1xf32> to vector<16x32xf32>
    %215 = arith.mulf %205, %214 : vector<16x32xf32>
    %216 = vector.broadcast %11 : vector<1x32xf32> to vector<16x32xf32>
    %217 = arith.mulf %215, %216 : vector<16x32xf32>
    %218 = vector.broadcast %12 : vector<1x32xf32> to vector<16x32xf32>
    %219 = arith.addf %217, %218 : vector<16x32xf32>
    %c0_79 = arith.constant 0 : index
    %c0_80 = arith.constant 0 : index
    %220 = vector.load %arg10[%c0_79, %c0_80] : memref<32x64xf32, #tpu.memory_space<vmem>>, vector<32x64xf32>
    %cst_81 = arith.constant dense<0.000000e+00> : vector<16x64xf32>
    %221 = tpu.matmul %219, %220, %cst_81 {dimension_numbers = #tpu.dot_dimension_numbers<[1], [0], [0], [1], [0, 0, 1, 1], [], []>} : vector<16x32xf32>, vector<32x64xf32>, vector<16x64xf32> -> vector<16x64xf32>
    %222 = vector.broadcast %7 : vector<1x64xf32> to vector<16x64xf32>
    %223 = arith.addf %221, %222 : vector<16x64xf32>
    %cst_82 = arith.constant 0.000000e+00 : f32
    %224 = vector.broadcast %cst_82 : f32 to vector<16x64xf32>
    %225 = arith.maximumf %223, %224 : vector<16x64xf32>
    %c0_83 = arith.constant 0 : index
    %c0_84 = arith.constant 0 : index
    %226 = vector.load %arg11[%c0_83, %c0_84] : memref<64x32xf32, #tpu.memory_space<vmem>>, vector<64x32xf32>
    %cst_85 = arith.constant dense<0.000000e+00> : vector<16x32xf32>
    %227 = tpu.matmul %225, %226, %cst_85 {dimension_numbers = #tpu.dot_dimension_numbers<[1], [0], [0], [1], [0, 0, 1, 1], [], []>} : vector<16x64xf32>, vector<64x32xf32>, vector<16x32xf32> -> vector<16x32xf32>
    %228 = vector.broadcast %8 : vector<1x32xf32> to vector<16x32xf32>
    %229 = arith.addf %227, %228 : vector<16x32xf32>
    %230 = arith.addf %229, %219 : vector<16x32xf32>
    %cst_86 = arith.constant dense<0.000000e+00> : vector<16xf32>
    %231 = vector.multi_reduction <add>, %230, %cst_86 [1] : vector<16x32xf32> to vector<16xf32>
    %232 = vector.shape_cast %231 : vector<16xf32> to vector<16x1xf32>
    %cst_87 = arith.constant 3.200000e+01 : f32
    %233 = vector.broadcast %cst_87 : f32 to vector<16x1xf32>
    %234 = arith.divf %232, %233 : vector<16x1xf32>
    %235 = vector.broadcast %234 : vector<16x1xf32> to vector<16x32xf32>
    %236 = arith.subf %230, %235 : vector<16x32xf32>
    %237 = arith.mulf %236, %236 : vector<16x32xf32>
    %cst_88 = arith.constant dense<0.000000e+00> : vector<16xf32>
    %238 = vector.multi_reduction <add>, %237, %cst_88 [1] : vector<16x32xf32> to vector<16xf32>
    %239 = vector.shape_cast %238 : vector<16xf32> to vector<16x1xf32>
    %cst_89 = arith.constant 3.200000e+01 : f32
    %240 = vector.broadcast %cst_89 : f32 to vector<16x1xf32>
    %241 = arith.divf %239, %240 : vector<16x1xf32>
    %cst_90 = arith.constant 9.99999974E-6 : f32
    %242 = vector.broadcast %cst_90 : f32 to vector<16x1xf32>
    %243 = arith.addf %241, %242 : vector<16x1xf32>
    %244 = math.rsqrt %243 : vector<16x1xf32>
    %245 = vector.broadcast %244 : vector<16x1xf32> to vector<16x32xf32>
    %246 = arith.mulf %236, %245 : vector<16x32xf32>
    %247 = vector.broadcast %13 : vector<1x32xf32> to vector<16x32xf32>
    %248 = arith.mulf %246, %247 : vector<16x32xf32>
    %249 = vector.broadcast %14 : vector<1x32xf32> to vector<16x32xf32>
    %250 = arith.addf %248, %249 : vector<16x32xf32>
    %251 = tpu.concatenate %250, %91, %195 in 1 : vector<16x32xf32>, vector<16x64xf32>, vector<16x64xf32> -> vector<16x160xf32>
    %c0_91 = arith.constant 0 : index
    %c0_92 = arith.constant 0 : index
    %252 = vector.load %arg13[%c0_91, %c0_92] : memref<16x160xf32, #tpu.memory_space<vmem>>, vector<16x160xf32>
    tpu.vector_store %arg13[%c0_91, %c0_92], %251 {strides = array<i32>} : memref<16x160xf32, #tpu.memory_space<vmem>>, vector<16x160xf32>,
    return
  }
  func.func @transform_0(%arg0: i32) -> (i32, i32) {
    %c0_i32 = arith.constant 0 : i32
    %c0_i32_0 = arith.constant 0 : i32
    %c0_i32_1 = arith.constant 0 : i32
    return %c0_i32, %c0_i32_0 : i32, i32
  }
  func.func @transform_1(%arg0: i32) -> (i32, i32) {
    %c0_i32 = arith.constant 0 : i32
    %c0_i32_0 = arith.constant 0 : i32
    %c0_i32_1 = arith.constant 0 : i32
    return %c0_i32, %c0_i32_0 : i32, i32
  }
  func.func @transform_2(%arg0: i32) -> (i32, i32) {
    %c0_i32 = arith.constant 0 : i32
    %c0_i32_0 = arith.constant 0 : i32
    %c0_i32_1 = arith.constant 0 : i32
    return %c0_i32, %c0_i32_0 : i32, i32
  }
  func.func @transform_3(%arg0: i32) -> (i32, i32) {
    %c0_i32 = arith.constant 0 : i32
    %c0_i32_0 = arith.constant 0 : i32
    %c0_i32_1 = arith.constant 0 : i32
    return %c0_i32, %c0_i32_0 : i32, i32
  }
  func.func @transform_4(%arg0: i32) -> (i32, i32) {
    %c0_i32 = arith.constant 0 : i32
    %c0_i32_0 = arith.constant 0 : i32
    %c0_i32_1 = arith.constant 0 : i32
    return %c0_i32, %c0_i32_0 : i32, i32
  }
  func.func @transform_5(%arg0: i32) -> (i32, i32) {
    %c0_i32 = arith.constant 0 : i32
    %c0_i32_0 = arith.constant 0 : i32
    %c0_i32_1 = arith.constant 0 : i32
    return %c0_i32, %c0_i32_0 : i32, i32
  }
  func.func @transform_6(%arg0: i32) -> (i32, i32) {
    %c0_i32 = arith.constant 0 : i32
    %c0_i32_0 = arith.constant 0 : i32
    %c0_i32_1 = arith.constant 0 : i32
    return %c0_i32, %c0_i32_0 : i32, i32
  }
  func.func @transform_7(%arg0: i32) -> (i32, i32) {
    %c0_i32 = arith.constant 0 : i32
    %c0_i32_0 = arith.constant 0 : i32
    %c0_i32_1 = arith.constant 0 : i32
    return %c0_i32, %c0_i32_0 : i32, i32
  }
  func.func @transform_8(%arg0: i32) -> (i32, i32) {
    %c0_i32 = arith.constant 0 : i32
    %c0_i32_0 = arith.constant 0 : i32
    %c0_i32_1 = arith.constant 0 : i32
    return %c0_i32, %c0_i32_0 : i32, i32
  }
  func.func @transform_9(%arg0: i32) -> (i32, i32) {
    %c0_i32 = arith.constant 0 : i32
    %c0_i32_0 = arith.constant 0 : i32
    %c0_i32_1 = arith.constant 0 : i32
    return %c0_i32, %c0_i32_0 : i32, i32
  }
  func.func @transform_10(%arg0: i32) -> (i32, i32) {
    %c0_i32 = arith.constant 0 : i32
    %c0_i32_0 = arith.constant 0 : i32
    %c0_i32_1 = arith.constant 0 : i32
    return %c0_i32, %c0_i32_0 : i32, i32
  }
  func.func @transform_11(%arg0: i32) -> (i32, i32) {
    %c0_i32 = arith.constant 0 : i32
    %c0_i32_0 = arith.constant 0 : i32
    %c0_i32_1 = arith.constant 0 : i32
    return %c0_i32, %c0_i32_0 : i32, i32
  }
  func.func @transform_12(%arg0: i32) -> (i32, i32) {
    %c0_i32 = arith.constant 0 : i32
    %c0_i32_0 = arith.constant 0 : i32
    %c0_i32_1 = arith.constant 0 : i32
    return %c0_i32, %c0_i32_0 : i32, i32
  }
}

</mosaic_0001>

<bundles_post_ra>
// kernel: tpu_custom_call.1
= control target key start
LH: loop header
LB: loop body
LE: loop exit
PB: predicated region body
PF: predicated region fallthrough
CT: control target
= control target key end

     0   :  { %17 = vsyncpa [#allocation3], 0  ;;  %s4286_s0 = inlined_call_operand.hbm [shape: f32[16,32], index: 0, kind: input, shape index: {}]   ;;  %s4287_s1 = inlined_call_operand.hbm [shape: f32[16,32], index: 1, kind: input, shape index: {}]   ;;  %s4288_s2 = inlined_call_operand.hbm [shape: f32[16,16], index: 2, kind: input, shape index: {}]   ;;  %s4289_s3 = inlined_call_operand.hbm [shape: f32[16,16], index: 3, kind: input, shape index: {}]   ;;  %s4290_s4 = inlined_call_operand.vmem [shape: f32[32,96], index: 4, kind: input, shape index: {}]   ;;  %s4291_s5 = inlined_call_operand.vmem [shape: f32[32,32], index: 5, kind: input, shape index: {}]   ;;  %s4292_s6 = inlined_call_operand.vmem [shape: f32[32,32], index: 6, kind: input, shape index: {}]   ;;  %s4293_s7 = inlined_call_operand.hbm [shape: f32[32,64], index: 7, kind: input, shape index: {}]   ;;  %s4294_s8 = inlined_call_operand.hbm [shape: f32[32,32], index: 8, kind: input, shape index: {}]   ;;  %s4295_s9 = inlined_call_operand.hbm [shape: f32[32,64], index: 9, kind: input, shape index: {}]   ;;  %s4296_s10 = inlined_call_operand.vmem [shape: f32[64,32], index: 10, kind: input, shape index: {}]   ;;  %s4297_s11 = inlined_call_operand.hbm [shape: f32[13,96], index: 11, kind: input, shape index: {}]   ;;  %s4298_s12 = inlined_call_operand.hbm [shape: f32[16,160], index: 12, kind: output, shape index: {}]  }
   0x1   :  { %18 = vsyncpa [#allocation6], 0 }
   0x2   :  { %19 = vsyncpa [#allocation9], 0 }
   0x3   :  { %20 = vsyncpa [#allocation12], 0 }
   0x4   :  { %21 = vsyncpa [#allocation15], 0 }
   0x5   :  { %22 = vsyncpa [#allocation4], 0  ;;  %s3595_s21 = smov [#allocation5]   ;;  %s3596_s23 = smov [#allocation8]  }
   0x6   :  { %s40_s22 = sshll.u32 %s3595_s21, 4  ;;  %s64_s24 = sshll.u32 %s3596_s23, 4  ;;  %s41_s22 = int_to_ptr.vmem [resolvable:$true] %s40_s22  ;;  %s3686_s24 = int_to_ptr.vmem [resolvable:$true] %s64_s24 }
   0x7   :  { %s3385_s27 = scalar_lea.hbm %s4287_s1, 256 }
   0x8   :  { %p3386_p0 = scmp.ne.s32.totalorder %s4287_s1, %s3385_s27  ;;  %p3389_p1 = scmp.lt.u32.totalorder %s3385_s27, %s4287_s1 }
   0xa   :  { %p3391_p2 = pnand %p3389_p1, %p3386_p0 }
   0xc   :  { %3394 = shalt.err (!%p3391_p2)
}
   0xd   :  { %s3395_s14 = scalar_lea.vmem %s41_s22, 256  ;;  %p3400_p4 = scmp.lt.s32.totalorder %s41_s22, %s41_s22 }
   0xe   :  { %p3396_p3 = scmp.ne.s32.totalorder %s41_s22, %s3395_s14  ;;  %p3401_p5 = scmp.lt.s32.totalorder %s3395_s14, %s3395_s14 }
  0x10   :  { %p3402_p6 = por %p3401_p5, %p3400_p4 }
  0x12   :  { %p3403_p7 = pnand %p3402_p6, %p3396_p3 }
  0x14   :  { %3406 = shalt.err (!%p3403_p7)
}
  0x15   :  { %s3597_s15 = smov 128   ;;  %s3598_s16 = smov 8  }
  0x16   :  { %46 = dma.hbm_to_vmem [thread:$0]  %s4287_s1, 256, %s41_s22, [#allocation6], %s3597_s15, %s3597_s15, %s3598_s16  }
  0x17   :  { %s3407_s21 = scalar_lea.hbm %s4289_s3, 256 }
  0x18   :  { %p3408_p8 = scmp.ne.s32.totalorder %s4289_s3, %s3407_s21  ;;  %p3411_p9 = scmp.lt.u32.totalorder %s3407_s21, %s4289_s3 }
  0x1a   :  { %p3413_p10 = pnand %p3411_p9, %p3408_p8 }
  0x1c   :  { %3416 = shalt.err (!%p3413_p10)
}
  0x1d   :  { %s3417_s28 = scalar_lea.vmem %s3686_s24, 256  ;;  %p3422_p12 = scmp.lt.s32.totalorder %s3686_s24, %s3686_s24 }
  0x1e   :  { %p3418_p11 = scmp.ne.s32.totalorder %s3686_s24, %s3417_s28  ;;  %p3423_p13 = scmp.lt.s32.totalorder %s3417_s28, %s3417_s28 }
  0x20   :  { %p3424_p0 = por %p3423_p13, %p3422_p12 }
  0x22   :  { %p3425_p1 = pnand %p3424_p0, %p3418_p11 }
  0x24   :  { %3428 = shalt.err (!%p3425_p1)
}
  0x25   :  { %70 = dma.hbm_to_vmem [thread:$0]  %s4289_s3, 256, %s3686_s24, [#allocation9], %s3597_s15, %s3597_s15, %s3598_s16  }
  0x26   :  { %s3599_s29 = smov [#allocation11]   ;;  %s3600_s13 = smov [#allocation2]  }
  0x27   :  { %s94_s30 = sshll.u32 %s3599_s29, 4  ;;  %s28_s14 = sshll.u32 %s3600_s13, 4  ;;  %s95_s30 = int_to_ptr.vmem [resolvable:$true] %s94_s30  ;;  %s3723_s14 = int_to_ptr.vmem [resolvable:$true] %s28_s14 }
  0x28   :  { %s3429_s19 = scalar_lea.hbm %s4294_s8, 512 }
  0x29   :  { %p3430_p2 = scmp.ne.s32.totalorder %s4294_s8, %s3429_s19  ;;  %p3433_p3 = scmp.lt.u32.totalorder %s3429_s19, %s4294_s8 }
  0x2b   :  { %p3435_p4 = pnand %p3433_p3, %p3430_p2 }
  0x2d   :  { %3438 = shalt.err (!%p3435_p4)
}
  0x2e   :  { %s3439_s3 = scalar_lea.vmem %s95_s30, 512  ;;  %p3444_p6 = scmp.lt.s32.totalorder %s95_s30, %s95_s30 }
  0x2f   :  { %p3440_p5 = scmp.ne.s32.totalorder %s95_s30, %s3439_s3  ;;  %p3445_p7 = scmp.lt.s32.totalorder %s3439_s3, %s3439_s3 }
  0x31   :  { %p3446_p8 = por %p3445_p7, %p3444_p6 }
  0x33   :  { %p3447_p9 = pnand %p3446_p8, %p3440_p5 }
  0x35   :  { %3450 = shalt.err (!%p3447_p9)
}
  0x36   :  { %100 = dma.hbm_to_vmem [thread:$0]  %s4294_s8, 512, %s95_s30, [#allocation12], %s3597_s15, %s3597_s15, %s3598_s16  }
  0x37   :  { %s3451_s1 = scalar_lea.hbm %s4286_s0, 256 }
  0x38   :  { %p3452_p10 = scmp.ne.s32.totalorder %s4286_s0, %s3451_s1  ;;  %p3455_p11 = scmp.lt.u32.totalorder %s3451_s1, %s4286_s0 }
  0x3a   :  { %p3457_p12 = pnand %p3455_p11, %p3452_p10 }
  0x3c   :  { %3460 = shalt.err (!%p3457_p12)
}
  0x3d   :  { %s3461_s18 = scalar_lea.vmem %s3723_s14, 256  ;;  %p3466_p0 = scmp.lt.s32.totalorder %s3723_s14, %s3723_s14 }
  0x3e   :  { %p3462_p13 = scmp.ne.s32.totalorder %s3723_s14, %s3461_s18  ;;  %p3467_p1 = scmp.lt.s32.totalorder %s3461_s18, %s3461_s18 }
  0x40   :  { %p3468_p2 = por %p3467_p1, %p3466_p0 }
  0x42   :  { %p3469_p3 = pnand %p3468_p2, %p3462_p13 }
  0x44   :  { %3472 = shalt.err (!%p3469_p3)
}
  0x45   :  { %34 = dma.hbm_to_vmem [thread:$0]  %s4286_s0, 256, %s3723_s14, [#allocation3], %s3597_s15, %s3597_s15, %s3598_s16  }
  0x46   :  { %s3601_s19 = smov [#allocation7]   ;;  %s3602_s21 = smov [#allocation10]  }
  0x47   :  { %s52_s20 = sshll.u32 %s3601_s19, 4  ;;  %s82_s23 = sshll.u32 %s3602_s21, 4  ;;  %s53_s20 = int_to_ptr.vmem [resolvable:$true] %s52_s20  ;;  %s3760_s23 = int_to_ptr.vmem [resolvable:$true] %s82_s23 }
  0x48   :  { %s3473_s24 = scalar_lea.hbm %s4288_s2, 256 }
  0x49   :  { %p3474_p4 = scmp.ne.s32.totalorder %s4288_s2, %s3473_s24  ;;  %p3477_p5 = scmp.lt.u32.totalorder %s3473_s24, %s4288_s2 }
  0x4b   :  { %p3479_p6 = pnand %p3477_p5, %p3474_p4 }
  0x4d   :  { %3482 = shalt.err (!%p3479_p6)
}
  0x4e   :  { %s3483_s0 = scalar_lea.vmem %s53_s20, 256  ;;  %p3488_p8 = scmp.lt.s32.totalorder %s53_s20, %s53_s20 }
  0x4f   :  { %p3484_p7 = scmp.ne.s32.totalorder %s53_s20, %s3483_s0  ;;  %p3489_p9 = scmp.lt.s32.totalorder %s3483_s0, %s3483_s0 }
  0x51   :  { %p3490_p10 = por %p3489_p9, %p3488_p8 }
  0x53   :  { %p3491_p11 = pnand %p3490_p10, %p3484_p7 }
  0x55   :  { %3494 = shalt.err (!%p3491_p11)
}
  0x56   :  { %58 = dma.hbm_to_vmem [thread:$0]  %s4288_s2, 256, %s53_s20, [#allocation6], %s3597_s15, %s3597_s15, %s3598_s16  }
  0x57   :  { %s3495_s17 = scalar_lea.hbm %s4293_s7, 512 }
  0x58   :  { %p3496_p12 = scmp.ne.s32.totalorder %s4293_s7, %s3495_s17  ;;  %p3499_p13 = scmp.lt.u32.totalorder %s3495_s17, %s4293_s7 }
  0x5a   :  { %p3501_p0 = pnand %p3499_p13, %p3496_p12 }
  0x5c   :  { %3504 = shalt.err (!%p3501_p0)
}
  0x5d   :  { %s3505_s21 = scalar_lea.vmem %s3760_s23, 512  ;;  %p3510_p2 = scmp.lt.s32.totalorder %s3760_s23, %s3760_s23 }
  0x5e   :  { %p3506_p1 = scmp.ne.s32.totalorder %s3760_s23, %s3505_s21  ;;  %p3511_p3 = scmp.lt.s32.totalorder %s3505_s21, %s3505_s21 }
  0x60   :  { %p3512_p4 = por %p3511_p3, %p3510_p2 }
  0x62   :  { %p3513_p5 = pnand %p3512_p4, %p3506_p1 }
  0x64   :  { %3516 = shalt.err (!%p3513_p5)
}
  0x65   :  { %88 = dma.hbm_to_vmem [thread:$0]  %s4293_s7, 512, %s3760_s23, [#allocation9], %s3597_s15, %s3597_s15, %s3598_s16  }
  0x66   :  { %s3603_s25 = smov [#allocation13]   ;;  %s3604_s24 = smov [#allocation14]  }
  0x67   :  { %s106_s3 = sshll.u32 %s3603_s25, 4  ;;  %s120_s26 = sshll.u32 %s3604_s24, 4  ;;  %s107_s3 = int_to_ptr.vmem [resolvable:$true] %s106_s3  ;;  %s3797_s26 = int_to_ptr.vmem [resolvable:$true] %s120_s26 }
  0x68   :  { %s3517_s1 = scalar_lea.hbm %s4295_s9, 512 }
  0x69   :  { %p3518_p6 = scmp.ne.s32.totalorder %s4295_s9, %s3517_s1  ;;  %p3521_p7 = scmp.lt.u32.totalorder %s3517_s1, %s4295_s9 }
  0x6b   :  { %p3523_p8 = pnand %p3521_p7, %p3518_p6 }
  0x6d   :  { %3526 = shalt.err (!%p3523_p8)
}
  0x6e   :  { %s3527_s7 = scalar_lea.vmem %s107_s3, 512  ;;  %p3532_p10 = scmp.lt.s32.totalorder %s107_s3, %s107_s3 }
  0x6f   :  { %p3528_p9 = scmp.ne.s32.totalorder %s107_s3, %s3527_s7  ;;  %p3533_p11 = scmp.lt.s32.totalorder %s3527_s7, %s3527_s7 }
  0x71   :  { %p3534_p12 = por %p3533_p11, %p3532_p10 }
  0x73   :  { %p3535_p13 = pnand %p3534_p12, %p3528_p9 }
  0x75   :  { %3538 = shalt.err (!%p3535_p13)
}
  0x76   :  { %112 = dma.hbm_to_vmem [thread:$0]  %s4295_s9, 512, %s107_s3, [#allocation12], %s3597_s15, %s3597_s15, %s3598_s16  }
  0x77   :  { %s3539_s8 = scalar_lea.hbm %s4297_s11, 256 }
  0x78   :  { %p3540_p0 = scmp.ne.s32.totalorder %s4297_s11, %s3539_s8  ;;  %p3543_p1 = scmp.lt.u32.totalorder %s3539_s8, %s4297_s11 }
  0x7a   :  { %p3545_p2 = pnand %p3543_p1, %p3540_p0 }
  0x7c   :  { %3548 = shalt.err (!%p3545_p2)
}
  0x7d   :  { %s3549_s20 = scalar_lea.vmem %s3797_s26, 256  ;;  %p3554_p4 = scmp.lt.s32.totalorder %s3797_s26, %s3797_s26 }
  0x7e   :  { %p3550_p3 = scmp.ne.s32.totalorder %s3797_s26, %s3549_s20  ;;  %p3555_p5 = scmp.lt.s32.totalorder %s3549_s20, %s3549_s20 }
  0x80   :  { %p3556_p6 = por %p3555_p5, %p3554_p4 }
  0x82   :  { %p3557_p7 = pnand %p3556_p6, %p3550_p3 }
  0x84   :  { %3560 = shalt.err (!%p3557_p7)
}
  0x85   :  { %126 = dma.hbm_to_vmem [thread:$0]  %s4297_s11, 256, %s3797_s26, [#allocation15], %s3597_s15, %s3597_s15, %s3598_s16  }
  0x86   :  { %3583 = dma.done.wait [#allocation3], 256  }
  0x87   :  { %3584 = vsyncadd [#allocation3], 4294967040 }
  0x88   :  { %3585 = dma.done.wait [#allocation6], 512  }
  0x89   :  { %3586 = vsyncadd [#allocation6], 4294966784 }
  0x8a   :  { %3587 = dma.done.wait [#allocation9], 768  }
  0x8b   :  { %3588 = vsyncadd [#allocation9], 4294966528 }
  0x8c   :  { %3589 = dma.done.wait [#allocation12], 1024  }
  0x8d   :  { %3590 = vsyncadd [#allocation12], 4294966272 }
  0x8e   :  { %3591 = dma.done.wait [#allocation15], 256  }
  0x8f   :  { %3592 = vsyncadd [#allocation15], 4294967040  ;;  %vm176_vm0 = vcmask 261120   ;;  %v168_v0 = vld [vmem:[%s4290_s4] sm:$0xff]  ;;  %v169_v1 = vld [vmem:[%s4290_s4 + $0x8] sm:$0xff]  ;;  %vm272_vm1 = vcmask 64512  }
  0x90   :  { %v170_v2 = vld [vmem:[%s4290_s4 + $0x10] sm:$0xff]  ;;  %v3064_v3 = vpack.c.bf16 %v169_v1, %v168_v0  ;;  %v171_v4 = vld [vmem:[%s4290_s4 + $0x18] sm:$0xff]  ;;  %v3846_v5 = vld [vmem:[#allocation2] sm:$0xff]  ;;  %s3605_s4 = smov 96   ;;  %s3606_s0 = smov 120   ;;  %vm358_vm3 = vcmask 130048  }
  0x91   :  { %v3068_v6 = vpack.c.bf16 %v171_v4, %v170_v2  ;;  %2875 = vmatprep.mubr.msk.f32.mxu1 %vm176_vm0, %v3846_v5  ;;  %v3850_v7 = vld [vmem:[#allocation2 + $0x8] sm:$0xff]  ;;  %v2682_v8 = vld [vmem:[#allocation14] ss:$0 sm:$0xff]  ;;  %s3607_s14 = smov 88   ;;  %vm3872_vm2 = vmpackc.low %vm272_vm1, %vm272_vm1  ;;  %s3608_s22 = smov 64   ;;  %vm1096_vm4 = vcmask 195584  }
  0x92   :  { %3065 = vmatprep.subr.bf16.mxu1 %v3064_v3  ;;  %v3888_v27 = vld [vmem:[#allocation7 + $0x8] sm:$0xff]  ;;  %v3890_v28 = vld [vmem:[#allocation7] sm:$0xff]  ;;  %s3609_s29 = smov 80   ;;  %s3610_s7 = smov 56   ;;  %vm2514_vm5 = vcmask 523264   ;;  %vm1121_vm6 = vcmask 392192  }
  0x93   :  { %3067 = vmatpush3.bf16.msra.mxu1 %v3064_v3  ;;  %s3611_s23 = smov 112   ;;  %s3612_s13 = smov 72   ;;  %vm2654_vm7 = vcmask 785408  }
  0x94   :  { %3069 = vmatprep.subr.bf16.mxu1 %v3068_v6  ;;  %s3613_s17 = smov 104   ;;  %s3614_s18 = smov 48  }
  0x95   :  { %s3615_s8 = smov 40   ;;  %s3616_s30 = smov 16  }
  0x96   :  { %s3617_s27 = smov 24  }
  0x97   :  { %3071 = vmatpush3.bf16.msra.mxu1 %v3068_v6 }
  0x9a   :  { %2876 = vmatmul.mubr.msk.f32.vlgmr.msra.gmra.mrb[0].mxu1 %vm176_vm0, %v3850_v7 }
 0x16d   :  { %v2877_v9 = vpop.f32.mrb[0].mxu1 }
 0x16e   :  { %v255_v10 = vadd.f32 %v2877_v9, %v2682_v8  ;;  %v249_v11 = vpop.f32.mrb[1].mxu1 }
 0x16f   :  { %v250_v12 = vadd.f32 %v2682_v8, %v249_v11 }
 0x170   :  { %v3864_v15 = vmul.f32 0.35355338, %v255_v10 }
 0x171   :  { %v3854_v13 = vpack.i.bf16 %v255_v10, %v250_v12  ;;  %v3856_v14 = vmul.f32 0.35355338, %v250_v12 }
 0x173   :  { %3235 = vrot.lane.b32.xlu0 %v3854_v13, %s3605_s4  ;;  %468 = vrot.lane.b32.xlu1 %v3856_v14, %s3606_s0 }
 0x174   :  { %2882 = vmatprep.mubr.msk.f32.mxu1 %vm272_vm1, %v3856_v14 }
 0x177   :  { %3240 = vrot.lane.b32.xlu0 %v3854_v13, %s3607_s14  ;;  %470 = vrot.lane.b32.xlu1 %v3864_v15, %s3606_s0 }
 0x1e5   :  { %v3236_v16 = vpop.permute.xlu0 %3235  ;;  %v469_v25 = vpop.permute.xlu1 %468 }
 0x1e6   :  { %v3238_v17 = vunpack.i.h.bf16 %v3236_v16  ;;  %v3237_v18 = vunpack.i.l.bf16 %v3236_v16 }
 0x1e8   :  { %v3072_v20 = vpack.c.bf16 %v3238_v17, %v3237_v18 }
 0x1e9   :  { %v3241_v21 = vpop.permute.xlu0 %3240  ;;  %v471_v26 = vpop.permute.xlu1 %470 }
 0x1ea   :  { %v3243_v22 = vunpack.i.h.bf16 %v3241_v21  ;;  %v3242_v23 = vunpack.i.l.bf16 %v3241_v21  ;;  %3074 = vmatprep.subr.msk.bf16.mxu1 %vm3872_vm2, %v3072_v20 }
 0x1eb   :  { %3077 = vmatpush3.bf16.xpose.msk.msra.mxu1 %vm3872_vm2, %v3072_v20 }
 0x1ec   :  { %v3082_v24 = vpack.c.bf16 %v3243_v22, %v3242_v23 }
 0x1ee   :  { %3084 = vmatprep.subr.msk.bf16.mxu1 %vm3872_vm2, %v3082_v24 }
 0x1f2   :  { %2883 = vmatmul.mubr.msk.f32.vlgmr.msra.gmra.mrb[2].mxu1 %vm272_vm1, %v3864_v15 }
 0x1f3   :  { %3087 = vmatpush3.bf16.xpose.msk.msra.mxu1 %vm3872_vm2, %v3082_v24  ;;  %2896 = vmatprep.mubr.msk.f32.mxu1 %vm272_vm1, %v469_v25 }
 0x1fa   :  { %2897 = vmatmul.mubr.msk.f32.vlgmr.msra.gmra.mrb[4].mxu1 %vm272_vm1, %v471_v26 }
 0x2c5   :  { %v2884_v29 = vpop.f32.mrb[2].mxu1 }
 0x2c6   :  { %v355_v30 = vadd.f32 %v2884_v29, %v3888_v27  ;;  %v349_v31 = vpop.f32.mrb[3].mxu1 }
 0x2c7   :  { %v350_v32 = vadd.f32 %v349_v31, %v3890_v28 }
 0x2c8   :  { %v362_v33 = vsel %vm358_vm3, %v355_v30, -inf }
 0x2c9   :  { %363 = vmax.xlane.f32.xlu1 %v362_v33  ;;  %v359_v34 = vsel %vm358_vm3, %v350_v32, -inf }
 0x2ca   :  { %360 = vmax.xlane.f32.xlu0 %v359_v34 }
 0x2cd   :  { %v2898_v35 = vpop.f32.mrb[4].mxu1 }
 0x2ce   :  { %v550_v36 = vpop.f32.mrb[5].mxu1  ;;  %v556_v38 = vadd.f32 %v2898_v35, %v3888_v27 }
 0x2cf   :  { %v551_v37 = vadd.f32 %v550_v36, %v3890_v28 }
 0x2d0   :  { %v562_v40 = vsel %vm358_vm3, %v556_v38, -inf }
 0x2d1   :  { %v559_v39 = vsel %vm358_vm3, %v551_v37, -inf }
 0x2d2   :  { %560 = vmax.xlane.f32.xlu0 %v559_v39 }
 0x2d6   :  { %563 = vmax.xlane.f32.xlu0 %v562_v40 }
 0x2da   :  { %3245 = vrot.lane.b32.xlu1 %v3854_v13, %s3608_s22 }
 0x356   :  { %v364_v41 = vpop.xlane.xlu1 %363 }
 0x357   :  { %v366_v42 = vsub.f32 %v355_v30, %v364_v41  ;;  %v361_v43 = vpop.xlane.xlu0 %360 }
 0x358   :  { %v365_v44 = vsub.f32 %v350_v32, %v361_v43 }
 0x359   :  { %v369_v45 = vmul.f32 1.442695, %v366_v42 }
 0x35a   :  { %v367_v46 = vmul.f32 1.442695, %v365_v44  ;;  %v3246_v47 = vpop.permute.xlu1 %3245 }
 0x35b   :  { %3309 = vpow2.f32 %v369_v45  ;;  %v3248_v48 = vunpack.i.h.bf16 %v3246_v47  ;;  %v3247_v49 = vunpack.i.l.bf16 %v3246_v47 }
 0x35c   :  { %3311 = vpow2.f32 %v367_v46 }
 0x35d   :  { %v3078_v50 = vpack.c.bf16 %v3248_v48, %v3247_v49 }
 0x35f   :  { %3079 = vmatprep.subr.bf16.mxu0 %v3078_v50  ;;  %v561_v51 = vpop.xlane.xlu0 %560 }
 0x360   :  { %3081 = vmatpush3.bf16.msra.mxu0 %v3078_v50  ;;  %v565_v61 = vsub.f32 %v551_v37, %v561_v51 }
 0x362   :  { %v567_v62 = vmul.f32 1.442695, %v565_v61 }
 0x363   :  { %v564_v52 = vpop.xlane.xlu0 %563 }
 0x364   :  { %v566_v53 = vsub.f32 %v556_v38, %v564_v52 }
 0x365   :  { %v3310_v54 = vpop.eup %3309 }
 0x366   :  { %v3312_v55 = vpop.eup %3311  ;;  %v569_v56 = vmul.f32 1.442695, %v566_v53  ;;  %v374_v57 = vsel %vm358_vm3, %v3310_v54, 0.0 }
 0x367   :  { %375 = vadd.xlane.f32.xlu0 %v374_v57  ;;  %v371_v58 = vsel %vm358_vm3, %v3312_v55, 0.0 }
 0x368   :  { %3313 = vpow2.f32 %v569_v56  ;;  %372 = vadd.xlane.f32.xlu1 %v371_v58 }
 0x369   :  { %3315 = vpow2.f32 %v567_v62 }
 0x372   :  { %v3314_v59 = vpop.eup %3313 }
 0x373   :  { %v574_v60 = vsel %vm358_vm3, %v3314_v59, 0.0  ;;  %v3316_v63 = vpop.eup %3315 }
 0x374   :  { %575 = vadd.xlane.f32.xlu0 %v574_v60  ;;  %v571_v0 = vsel %vm358_vm3, %v3316_v63, 0.0 }
 0x379   :  { %3255 = vrot.lane.b32.xlu1 %v3854_v13, %s3609_s29 }
 0x38a   :  { %3250 = vrot.lane.b32.xlu0 %v3854_v13, %s3610_s7 }
 0x38e   :  { %670 = vrot.lane.b32.xlu0 %v3864_v15, %s3611_s23 }
 0x39d   :  { %572 = vadd.xlane.f32.xlu1 %v571_v0 }
 0x3ae   :  { %668 = vrot.lane.b32.xlu1 %v3856_v14, %s3611_s23 }
 0x3f4   :  { %v376_v1 = vpop.xlane.xlu0 %375 }
 0x3f5   :  { %3317 = vrcp.f32 %v376_v1  ;;  %v373_v2 = vpop.xlane.xlu1 %372 }
 0x3f6   :  { %3319 = vrcp.f32 %v373_v2 }
 0x3f9   :  { %v3256_v10 = vpop.permute.xlu1 %3255 }
 0x3fa   :  { %v3258_v12 = vunpack.i.h.bf16 %v3256_v10  ;;  %v3257_v16 = vunpack.i.l.bf16 %v3256_v10 }
 0x3fc   :  { %v3092_v21 = vpack.c.bf16 %v3258_v12, %v3257_v16 }
 0x3ff   :  { %v3318_v3 = vpop.eup %3317 }
 0x400   :  { %v3320_v4 = vpop.eup %3319  ;;  %v3914_v9 = vmul.f32 %v3318_v3, %v3310_v54 }
 0x401   :  { %v576_v6 = vpop.xlane.xlu0 %575  ;;  %v3912_v8 = vmul.f32 %v3320_v4, %v3312_v55 }
 0x402   :  { %3321 = vrcp.f32 %v576_v6 }
 0x403   :  { %2889 = vmatprep.mubr.msk.f32.mxu0 %vm358_vm3, %v3912_v8 }
 0x404   :  { %2890 = vmatmul.mubr.msk.f32.vlgmr.msra.gmra.mrb[0].mxu0 %vm358_vm3, %v3914_v9 }
 0x405   :  { %v3251_v11 = vpop.permute.xlu0 %3250 }
 0x406   :  { %v3253_v17 = vunpack.i.h.bf16 %v3251_v11  ;;  %v3252_v18 = vunpack.i.l.bf16 %v3251_v11 }
 0x408   :  { %v3088_v20 = vpack.c.bf16 %v3253_v17, %v3252_v18 }
 0x409   :  { %v671_v30 = vpop.permute.xlu0 %670 }
 0x40a   :  { %3089 = vmatprep.subr.bf16.mxu0 %v3088_v20 }
 0x40b   :  { %3091 = vmatpush3.bf16.msra.mxu0 %v3088_v20 }
 0x40c   :  { %3094 = vmatprep.subr.msk.bf16.mxu0 %vm3872_vm2, %v3092_v21  ;;  %v3322_v23 = vpop.eup %3321 }
 0x40d   :  { %v3924_v26 = vmul.f32 %v3322_v23, %v3314_v59 }
 0x42a   :  { %v573_v22 = vpop.xlane.xlu1 %572 }
 0x42b   :  { %3323 = vrcp.f32 %v573_v22 }
 0x42e   :  { %v669_v29 = vpop.permute.xlu1 %668 }
 0x435   :  { %v3324_v24 = vpop.eup %3323 }
 0x436   :  { %v3922_v25 = vmul.f32 %v3324_v24, %v3316_v63 }
 0x438   :  { %2903 = vmatprep.mubr.msk.f32.mxu0 %vm358_vm3, %v3922_v25 }
 0x439   :  { %2904 = vmatmul.mubr.msk.f32.vlgmr.msra.gmra.mrb[2].mxu0 %vm358_vm3, %v3924_v26 }
 0x43a   :  { %3097 = vmatpush3.bf16.xpose.msk.msra.mxu0 %vm3872_vm2, %v3092_v21  ;;  %2910 = vmatprep.mubr.msk.f32.mxu0 %vm272_vm1, %v669_v29 }
 0x441   :  { %2911 = vmatmul.mubr.msk.f32.vlgmr.msra.gmra.mrb[4].mxu0 %vm272_vm1, %v671_v30 }
 0x4d7   :  { %v3934_v31 = vpop.f32.mrb[0].mxu0 }
 0x4d8   :  { %v3936_v32 = vpop.f32.mrb[1].mxu0 }
 0x50c   :  { %v3938_v33 = vpop.f32.mrb[2].mxu0 }
 0x50d   :  { %v3940_v34 = vpop.f32.mrb[3].mxu0 }
 0x514   :  { %v2912_v35 = vpop.f32.mrb[4].mxu0 }
 0x515   :  { %v756_v36 = vadd.f32 %v2912_v35, %v3888_v27  ;;  %v750_v37 = vpop.f32.mrb[5].mxu0 }
 0x516   :  { %v751_v38 = vadd.f32 %v750_v37, %v3890_v28 }
 0x517   :  { %v762_v39 = vsel %vm358_vm3, %v756_v36, -inf }
 0x518   :  { %763 = vmax.xlane.f32.xlu0 %v762_v39  ;;  %v759_v40 = vsel %vm358_vm3, %v751_v38, -inf }
 0x519   :  { %760 = vmax.xlane.f32.xlu1 %v759_v40  ;;  %v260_v40 = vld [vmem:[%s4291_s5] sm:$0xff] }
 0x5a5   :  { %v764_v41 = vpop.xlane.xlu0 %763 }
 0x5a6   :  { %v766_v42 = vsub.f32 %v756_v36, %v764_v41  ;;  %v761_v43 = vpop.xlane.xlu1 %760  ;;  %v261_v41 = vld [vmem:[%s4291_s5 + $0x8] sm:$0xff] }
 0x5a7   :  { %v765_v44 = vsub.f32 %v751_v38, %v761_v43  ;;  %v3112_v43 = vpack.c.bf16 %v261_v41, %v260_v40 }
 0x5a8   :  { %v769_v45 = vmul.f32 1.442695, %v766_v42  ;;  %v262_v42 = vld [vmem:[%s4291_s5 + $0x10] sm:$0xff] }
 0x5a9   :  { %v767_v46 = vmul.f32 1.442695, %v765_v44  ;;  %v263_v44 = vld [vmem:[%s4291_s5 + $0x18] sm:$0xff] }
 0x5aa   :  { %3325 = vpow2.f32 %v769_v45  ;;  %v3116_v45 = vpack.c.bf16 %v263_v44, %v262_v42 }
 0x5ab   :  { %3327 = vpow2.f32 %v767_v46 }
 0x5b4   :  { %v3326_v47 = vpop.eup %3325 }
 0x5b5   :  { %v3328_v48 = vpop.eup %3327  ;;  %v774_v49 = vsel %vm358_vm3, %v3326_v47, 0.0 }
 0x5b6   :  { %775 = vadd.xlane.f32.xlu1 %v774_v49  ;;  %v771_v50 = vsel %vm358_vm3, %v3328_v48, 0.0 }
 0x5b7   :  { %772 = vadd.xlane.f32.xlu0 %v771_v50 }
 0x5c7   :  { %3265 = vrot.lane.b32.xlu1 %v3854_v13, %s3612_s13 }
 0x5cb   :  { %868 = vrot.lane.b32.xlu1 %v3856_v14, %s3613_s17 }
 0x5cd   :  { %3260 = vrot.lane.b32.xlu0 %v3854_v13, %s3614_s18 }
 0x5d1   :  { %870 = vrot.lane.b32.xlu0 %v3864_v15, %s3613_s17 }
 0x643   :  { %v776_v51 = vpop.xlane.xlu1 %775 }
 0x644   :  { %3329 = vrcp.f32 %v776_v51  ;;  %v773_v52 = vpop.xlane.xlu0 %772 }
 0x645   :  { %3331 = vrcp.f32 %v773_v52 }
 0x647   :  { %v3266_v53 = vpop.permute.xlu1 %3265 }
 0x648   :  { %v3261_v54 = vpop.permute.xlu0 %3260  ;;  %v3268_v55 = vunpack.i.h.bf16 %v3266_v53  ;;  %v3267_v56 = vunpack.i.l.bf16 %v3266_v53 }
 0x649   :  { %v3263_v57 = vunpack.i.h.bf16 %v3261_v54  ;;  %v3262_v58 = vunpack.i.l.bf16 %v3261_v54 }
 0x64a   :  { %v3102_v60 = vpack.c.bf16 %v3268_v55, %v3267_v56 }
 0x64b   :  { %v3098_v59 = vpack.c.bf16 %v3263_v57, %v3262_v58  ;;  %v869_v63 = vpop.permute.xlu1 %868 }
 0x64c   :  { %v871_v0 = vpop.permute.xlu0 %870 }
 0x64d   :  { %3099 = vmatprep.subr.bf16.mxu1 %v3098_v59 }
 0x64e   :  { %v3330_v14 = vpop.eup %3329  ;;  %3101 = vmatpush3.bf16.msra.mxu1 %v3098_v59 }
 0x64f   :  { %v3332_v61 = vpop.eup %3331  ;;  %3104 = vmatprep.subr.msk.bf16.mxu1 %vm3872_vm2, %v3102_v60  ;;  %v3960_v62 = vmul.f32 %v3330_v14, %v3326_v47 }
 0x650   :  { %v3958_v15 = vmul.f32 %v3332_v61, %v3328_v48 }
 0x652   :  { %2917 = vmatprep.mubr.msk.f32.mxu1 %vm358_vm3, %v3958_v15 }
 0x653   :  { %2918 = vmatmul.mubr.msk.f32.vlgmr.msra.gmra.mrb[6].mxu1 %vm358_vm3, %v3960_v62 }
 0x654   :  { %2924 = vmatprep.mubr.msk.f32.mxu1 %vm272_vm1, %v869_v63 }
 0x657   :  { %3107 = vmatpush3.bf16.xpose.msk.msra.mxu1 %vm3872_vm2, %v3102_v60  ;;  %v2709_v60 = vld [vmem:[#allocation14 + $0x1] ss:$0 sm:$0xff] }
 0x65e   :  { %2925 = vmatmul.mubr.msk.f32.vlgmr.msra.gmra.mrb[8].mxu1 %vm272_vm1, %v871_v0 }
 0x726   :  { %v2919_v1 = vpop.f32.mrb[6].mxu1 }
 0x727   :  { %v859_v2 = vpop.f32.mrb[7].mxu1 }
 0x731   :  { %v2926_v3 = vpop.f32.mrb[8].mxu1 }
 0x732   :  { %v956_v4 = vadd.f32 %v2926_v3, %v3888_v27  ;;  %v950_v6 = vpop.f32.mrb[9].mxu1 }
 0x733   :  { %v951_v10 = vadd.f32 %v950_v6, %v3890_v28 }
 0x734   :  { %v962_v11 = vsel %vm358_vm3, %v956_v4, -inf }
 0x735   :  { %963 = vmax.xlane.f32.xlu0 %v962_v11  ;;  %v959_v12 = vsel %vm358_vm3, %v951_v10, -inf }
 0x736   :  { %960 = vmax.xlane.f32.xlu1 %v959_v12 }
 0x7c2   :  { %v964_v16 = vpop.xlane.xlu0 %963 }
 0x7c3   :  { %v966_v17 = vsub.f32 %v956_v4, %v964_v16  ;;  %v961_v18 = vpop.xlane.xlu1 %960 }
 0x7c4   :  { %v965_v20 = vsub.f32 %v951_v10, %v961_v18 }
 0x7c5   :  { %v969_v21 = vmul.f32 1.442695, %v966_v17 }
 0x7c6   :  { %v967_v22 = vmul.f32 1.442695, %v965_v20  ;;  %v1342_v20 = vld [vmem:[#allocation10 + $0x8] sm:$0xff] }
 0x7c7   :  { %3333 = vpow2.f32 %v969_v21 }
 0x7c8   :  { %3335 = vpow2.f32 %v967_v22  ;;  %v1343_v22 = vld [vmem:[#allocation10 + $0x10] sm:$0xff] }
 0x7d1   :  { %v3334_v23 = vpop.eup %3333 }
 0x7d2   :  { %v3336_v24 = vpop.eup %3335  ;;  %v974_v27 = vsel %vm358_vm3, %v3334_v23, 0.0 }
 0x7d3   :  { %975 = vadd.xlane.f32.xlu1 %v974_v27  ;;  %v971_v28 = vsel %vm358_vm3, %v3336_v24, 0.0  ;;  %v153_v27 = vld [vmem:[#allocation5] sm:$0xff] }
 0x7d4   :  { %972 = vadd.xlane.f32.xlu0 %v971_v28  ;;  %v154_v28 = vld [vmem:[#allocation5 + $0x8] sm:$0xff] }
 0x7e4   :  { %1070 = vrot.lane.b32.xlu1 %v3940_v34, %s3598_s16 }
 0x7e8   :  { %1072 = vrot.lane.b32.xlu1 %v3938_v33, %s3598_s16 }
 0x7ea   :  { %3270 = vrot.lane.b32.xlu0 %v3854_v13, %s3615_s8 }
 0x7ec   :  { %1080 = vrot.lane.b32.xlu1 %v2919_v1, %s3616_s30 }
 0x7ee   :  { %1078 = vrot.lane.b32.xlu0 %v859_v2, %s3616_s30 }
 0x860   :  { %v976_v29 = vpop.xlane.xlu1 %975 }
 0x861   :  { %3337 = vrcp.f32 %v976_v29  ;;  %v973_v30 = vpop.xlane.xlu0 %972  ;;  %v1250_v29 = vld [vmem:[%s4292_s6] sm:$0xff] }
 0x862   :  { %3339 = vrcp.f32 %v973_v30  ;;  %v1251_v30 = vld [vmem:[%s4292_s6 + $0x8] sm:$0xff] }
 0x864   :  { %v1071_v48 = vpop.permute.xlu1 %1070 }
 0x865   :  { %v3271_v35 = vpop.permute.xlu0 %3270  ;;  %v1092_v52 = vsel %vm272_vm1, %v3936_v32, %v1071_v48 }
 0x866   :  { %v3273_v36 = vunpack.i.h.bf16 %v3271_v35  ;;  %v3272_v37 = vunpack.i.l.bf16 %v3271_v35  ;;  %v3120_v35 = vpack.c.bf16 %v1251_v30, %v1250_v29 }
 0x868   :  { %v3108_v38 = vpack.c.bf16 %v3273_v36, %v3272_v37  ;;  %v1073_v49 = vpop.permute.xlu1 %1072  ;;  %3121 = vmatprep.subr.bf16.mxu1 %v3120_v35  ;;  %v1252_v36 = vld [vmem:[%s4292_s6 + $0x10] sm:$0xff]  ;;  %v1253_v37 = vld [vmem:[%s4292_s6 + $0x18] sm:$0xff] }
 0x869   :  { %v1079_v51 = vpop.permute.xlu0 %1078  ;;  %v1093_v54 = vsel %vm272_vm1, %v3934_v31, %v1073_v49  ;;  %3123 = vmatpush3.bf16.msra.mxu1 %v3120_v35 }
 0x86a   :  { %3109 = vmatprep.subr.bf16.mxu0 %v3108_v38  ;;  %v1094_v55 = vsel %vm358_vm3, %v1092_v52, %v1079_v51 }
 0x86b   :  { %v3338_v34 = vpop.eup %3337  ;;  %3111 = vmatpush3.bf16.msra.mxu0 %v3108_v38  ;;  %v3124_v38 = vpack.c.bf16 %v1253_v37, %v1252_v36 }
 0x86c   :  { %v3340_v33 = vpop.eup %3339  ;;  %v3985_v13 = vmul.f32 %v3338_v34, %v3334_v23  ;;  %3113 = vmatprep.subr.bf16.mxu0 %v3112_v43  ;;  %v1081_v50 = vpop.permute.xlu1 %1080  ;;  %v1344_v23 = vld [vmem:[#allocation10 + $0x18] sm:$0xff] }
 0x86d   :  { %v3983_v39 = vmul.f32 %v3340_v33, %v3336_v24  ;;  %v1095_v57 = vsel %vm358_vm3, %v1093_v54, %v1081_v50  ;;  %v3132_v24 = vpack.c.bf16 %v1344_v23, %v1343_v22  ;;  %3125 = vmatprep.subr.bf16.mxu1 %v3124_v38  ;;  %v2717_v54 = vld [vmem:[#allocation14 + $0x3] ss:$0 sm:$0xff] }
 0x86e   :  { %3127 = vmatpush3.bf16.msra.mxu1 %v3124_v38 }
 0x86f   :  { %2931 = vmatprep.mubr.msk.f32.mxu0 %vm358_vm3, %v3983_v39 }
 0x870   :  { %2932 = vmatmul.mubr.msk.f32.vlgmr.msra.gmra.mrb[6].mxu0 %vm358_vm3, %v3985_v13 }
 0x871   :  { %3115 = vmatpush3.bf16.msra.mxu0 %v3112_v43 }
 0x872   :  { %3117 = vmatprep.subr.bf16.mxu0 %v3116_v45 }
 0x875   :  { %3119 = vmatpush3.bf16.msra.mxu0 %v3116_v45  ;;  %v2712_v45 = vld [vmem:[#allocation14 + $0x7] ss:$0 sm:$0xff] }
 0x943   :  { %v2933_v46 = vpop.f32.mrb[6].mxu0 }
 0x944   :  { %1088 = vrot.lane.b32.xlu1 %v2933_v46, %s3617_s27  ;;  %v1059_v47 = vpop.f32.mrb[7].mxu0 }
 0x945   :  { %1086 = vrot.lane.b32.xlu0 %v1059_v47, %s3617_s27  ;;  %v2713_v47 = vld [vmem:[#allocation14 + $0x8] ss:$0 sm:$0xff] }
 0x9b6   :  { %v1089_v53 = vpop.permute.xlu1 %1088 }
 0x9b7   :  { %v1087_v56 = vpop.permute.xlu0 %1086  ;;  %v1098_v59 = vsel %vm1096_vm4, %v1095_v57, %v1089_v53 }
 0x9b8   :  { %v1097_v58 = vsel %vm1096_vm4, %v1094_v55, %v1087_v56 }
 0x9b9   :  { %2942 = vmatprep.mubr.msk.f32.mxu0 %vm176_vm0, %v1097_v58 }
 0x9ba   :  { %2943 = vmatmul.mubr.msk.f32.vlgmr.msra.gmra.mrb[8].mxu0 %vm176_vm0, %v1098_v59 }
 0x9bb   :  { %2964 = vmatprep.mubr.msk.f32.mxu0 %vm176_vm0, %v153_v27 }
 0xa8d   :  { %v2944_v14 = vpop.f32.mrb[8].mxu0 }
 0xa8e   :  { %v1206_v32 = vadd.f32 %v2944_v14, %v2709_v60  ;;  %v1200_v61 = vpop.f32.mrb[9].mxu0 }
 0xa8f   :  { %v1201_v63 = vadd.f32 %v2709_v60, %v1200_v61 }
 0xa90   :  { %v1210_v31 = vadd.f32 %v1206_v32, %v3850_v7 }
 0xa91   :  { %v1209_v0 = vadd.f32 %v1201_v63, %v3846_v5  ;;  %v1341_v5 = vld [vmem:[#allocation10] sm:$0xff] }
 0xa92   :  { %v1214_v1 = vsel %vm176_vm0, %v1210_v31, 0.0  ;;  %v3128_v21 = vpack.c.bf16 %v1342_v20, %v1341_v5 }
 0xa93   :  { %1215 = vadd.xlane.f32.xlu1 %v1214_v1  ;;  %v1211_v2 = vsel %vm176_vm0, %v1209_v0, 0.0 }
 0xa94   :  { %1212 = vadd.xlane.f32.xlu0 %v1211_v2  ;;  %3129 = vmatprep.subr.bf16.mxu0 %v3128_v21 }
 0xa95   :  { %3131 = vmatpush3.bf16.msra.mxu0 %v3128_v21 }
 0xa96   :  { %3133 = vmatprep.subr.bf16.mxu0 %v3132_v24 }
 0xa99   :  { %3135 = vmatpush3.bf16.msra.mxu0 %v3132_v24 }
 0xa9c   :  { %2965 = vmatmul.mubr.msk.f32.vlgmr.msra.gmra.mrb[10].mxu0 %vm176_vm0, %v154_v28 }
 0xb20   :  { %v1216_v3 = vpop.xlane.xlu1 %1215 }
 0xb21   :  { %v1219_v4 = vmul.f32 0.03125, %v1216_v3  ;;  %v1213_v6 = vpop.xlane.xlu0 %1212 }
 0xb22   :  { %v1218_v10 = vmul.f32 0.03125, %v1213_v6 }
 0xb23   :  { %v1221_v11 = vsub.f32 %v1210_v31, %v1219_v4  ;;  %v2714_v31 = vld [vmem:[#allocation14 + $0x2] ss:$0 sm:$0xff] }
 0xb24   :  { %v1220_v12 = vsub.f32 %v1209_v0, %v1218_v10 }
 0xb25   :  { %v1223_v18 = vmul.f32 %v1221_v11, %v1221_v11 }
 0xb26   :  { %v1222_v16 = vmul.f32 %v1220_v12, %v1220_v12 }
 0xb27   :  { %v1227_v7 = vsel %vm176_vm0, %v1223_v18, 0.0 }
 0xb28   :  { %v1224_v17 = vsel %vm176_vm0, %v1222_v16, 0.0  ;;  %v4071_v16 = vld [vmem:[#allocation8] sm:$0xff] }
 0xb29   :  { %1225 = vadd.xlane.f32.xlu0 %v1224_v17 }
 0xb2d   :  { %1228 = vadd.xlane.f32.xlu0 %v1227_v7 }
 0xb6f   :  { %v2966_v55 = vpop.f32.mrb[10].mxu0 }
 0xb70   :  { %v1427_v56 = vadd.f32 %v2966_v55, %v2717_v54  ;;  %v1421_v57 = vpop.f32.mrb[11].mxu0 }
 0xb71   :  { %v1422_v58 = vadd.f32 %v2717_v54, %v1421_v57 }
 0xb73   :  { %v4043_v59 = vpack.i.bf16 %v1427_v56, %v1422_v58  ;;  %v3136_v60 = vpack.c.bf16 %v1427_v56, %v1422_v58 }
 0xb75   :  { %3275 = vrot.lane.b32.xlu1 %v4043_v59, %s3606_s0  ;;  %3138 = vmatprep.subr.msk.bf16.mxu1 %vm3872_vm2, %v3136_v60 }
 0xbb6   :  { %v1226_v34 = vpop.xlane.xlu0 %1225 }
 0xbb7   :  { %v1230_v33 = vmul.f32 0.03125, %v1226_v34 }
 0xbb9   :  { %v1232_v40 = vadd.f32 1e-05, %v1230_v33 }
 0xbba   :  { %v1229_v41 = vpop.xlane.xlu0 %1228 }
 0xbbb   :  { %3341 = vrsqrt.f32 %v1232_v40  ;;  %v1231_v42 = vmul.f32 0.03125, %v1229_v41 }
 0xbbd   :  { %v1233_v43 = vadd.f32 1e-05, %v1231_v42 }
 0xbbf   :  { %3343 = vrsqrt.f32 %v1233_v43 }
 0xbc5   :  { %v3342_v44 = vpop.eup %3341 }
 0xbc6   :  { %v1236_v46 = vmul.f32 %v3342_v44, %v1220_v12  ;;  %v4069_v12 = vld [vmem:[#allocation8 + $0x8] sm:$0xff] }
 0xbc8   :  { %v1242_v48 = vmul.f32 %v2712_v45, %v1236_v46 }
 0xbc9   :  { %v3344_v49 = vpop.eup %3343 }
 0xbca   :  { %v1237_v50 = vmul.f32 %v3344_v49, %v1221_v11  ;;  %v4035_v51 = vadd.f32 %v2713_v47, %v1242_v48 }
 0xbcc   :  { %v1243_v52 = vmul.f32 %v2712_v45, %v1237_v50  ;;  %2953 = vmatprep.mubr.msk.f32.mxu1 %vm176_vm0, %v4035_v51 }
 0xbce   :  { %v4039_v53 = vadd.f32 %v2713_v47, %v1243_v52 }
 0xbd0   :  { %2954 = vmatmul.mubr.msk.f32.vlgmr.msra.gmra.mrb[10].mxu1 %vm176_vm0, %v4039_v53 }
 0xbd1   :  { %3141 = vmatpush3.bf16.xpose.msk.msra.mxu1 %vm3872_vm2, %v3136_v60 }
 0xbe7   :  { %v3276_v14 = vpop.permute.xlu1 %3275 }
 0xbe8   :  { %v3278_v32 = vunpack.i.h.bf16 %v3276_v14  ;;  %v3277_v61 = vunpack.i.l.bf16 %v3276_v14 }
 0xbea   :  { %v3146_v63 = vpack.c.bf16 %v3278_v32, %v3277_v61 }
 0xbec   :  { %3148 = vmatprep.subr.msk.bf16.mxu1 %vm3872_vm2, %v3146_v63 }
 0xca3   :  { %v2955_v0 = vpop.f32.mrb[10].mxu1 }
 0xca4   :  { %v1336_v1 = vadd.f32 %v2955_v0, %v2714_v31  ;;  %v1330_v2 = vpop.f32.mrb[11].mxu1 }
 0xca5   :  { %v1331_v3 = vadd.f32 %v2714_v31, %v1330_v2 }
 0xca6   :  { %v4053_v4 = vmul.f32 0.35355338, %v1336_v1 }
 0xca7   :  { %v4055_v6 = vmul.f32 0.35355338, %v1331_v3 }
 0xca8   :  { %1634 = vrot.lane.b32.xlu1 %v4053_v4, %s3606_s0 }
 0xca9   :  { %1632 = vrot.lane.b32.xlu0 %v4055_v6, %s3606_s0  ;;  %2971 = vmatprep.mubr.msk.f32.mxu1 %vm272_vm1, %v4055_v6 }
 0xcaa   :  { %2972 = vmatmul.mubr.msk.f32.vlgmr.msra.gmra.mrb[12].mxu1 %vm272_vm1, %v4053_v4 }
 0xcab   :  { %3151 = vmatpush3.bf16.xpose.msk.msra.mxu1 %vm3872_vm2, %v3146_v63 }
 0xd1a   :  { %v1635_v11 = vpop.permute.xlu1 %1634 }
 0xd1b   :  { %v1633_v10 = vpop.permute.xlu0 %1632 }
 0xd1c   :  { %2985 = vmatprep.mubr.msk.f32.mxu1 %vm272_vm1, %v1633_v10 }
 0xd1d   :  { %2986 = vmatmul.mubr.msk.f32.vlgmr.msra.gmra.mrb[14].mxu1 %vm272_vm1, %v1635_v11 }
 0xd7d   :  { %v2973_v17 = vpop.f32.mrb[12].mxu1 }
 0xd7e   :  { %v1520_v18 = vadd.f32 %v2973_v17, %v4069_v12  ;;  %v1514_v7 = vpop.f32.mrb[13].mxu1 }
 0xd7f   :  { %v1515_v5 = vadd.f32 %v1514_v7, %v4071_v16 }
 0xd80   :  { %v1526_v20 = vsel %vm358_vm3, %v1520_v18, -inf }
 0xd81   :  { %1527 = vmax.xlane.f32.xlu0 %v1526_v20  ;;  %v1523_v21 = vsel %vm358_vm3, %v1515_v5, -inf }
 0xd82   :  { %1524 = vmax.xlane.f32.xlu1 %v1523_v21 }
 0xdf0   :  { %v2987_v22 = vpop.f32.mrb[14].mxu1 }
 0xdf1   :  { %v1720_v23 = vadd.f32 %v2987_v22, %v4069_v12  ;;  %v1714_v24 = vpop.f32.mrb[15].mxu1 }
 0xdf2   :  { %v1715_v27 = vadd.f32 %v1714_v24, %v4071_v16 }
 0xdf3   :  { %v1726_v28 = vsel %vm358_vm3, %v1720_v23, -inf }
 0xdf4   :  { %1727 = vmax.xlane.f32.xlu1 %v1726_v28  ;;  %v1723_v29 = vsel %vm358_vm3, %v1715_v27, -inf }
 0xdf5   :  { %1724 = vmax.xlane.f32.xlu0 %v1723_v29 }
 0xe0e   :  { %v1528_v30 = vpop.xlane.xlu0 %1527 }
 0xe0f   :  { %v1530_v35 = vsub.f32 %v1520_v18, %v1528_v30  ;;  %v1525_v36 = vpop.xlane.xlu1 %1524 }
 0xe10   :  { %v1529_v37 = vsub.f32 %v1515_v5, %v1525_v36 }
 0xe11   :  { %v1533_v38 = vmul.f32 1.442695, %v1530_v35 }
 0xe12   :  { %v1531_v34 = vmul.f32 1.442695, %v1529_v37 }
 0xe13   :  { %3345 = vpow2.f32 %v1533_v38 }
 0xe14   :  { %3347 = vpow2.f32 %v1531_v34 }
 0xe1d   :  { %v3346_v33 = vpop.eup %3345 }
 0xe1e   :  { %v3348_v40 = vpop.eup %3347  ;;  %v1538_v41 = vsel %vm358_vm3, %v3346_v33, 0.0 }
 0xe1f   :  { %1539 = vadd.xlane.f32.xlu1 %v1538_v41  ;;  %v1535_v42 = vsel %vm358_vm3, %v3348_v40, 0.0 }
 0xe20   :  { %1536 = vadd.xlane.f32.xlu0 %v1535_v42 }
 0xe81   :  { %v1728_v43 = vpop.xlane.xlu1 %1727 }
 0xe82   :  { %v1730_v44 = vsub.f32 %v1720_v23, %v1728_v43  ;;  %v1725_v45 = vpop.xlane.xlu0 %1724 }
 0xe83   :  { %v1729_v46 = vsub.f32 %v1715_v27, %v1725_v45 }
 0xe84   :  { %v1733_v47 = vmul.f32 1.442695, %v1730_v44 }
 0xe85   :  { %v1731_v48 = vmul.f32 1.442695, %v1729_v46 }
 0xe86   :  { %3349 = vpow2.f32 %v1733_v47 }
 0xe87   :  { %3351 = vpow2.f32 %v1731_v48 }
 0xe90   :  { %v3350_v49 = vpop.eup %3349 }
 0xe91   :  { %v3352_v50 = vpop.eup %3351  ;;  %v1738_v52 = vsel %vm358_vm3, %v3350_v49, 0.0 }
 0xe92   :  { %1739 = vadd.xlane.f32.xlu1 %v1738_v52  ;;  %v1735_v54 = vsel %vm358_vm3, %v3352_v50, 0.0 }
 0xe93   :  { %1736 = vadd.xlane.f32.xlu0 %v1735_v54 }
 0xea3   :  { %3285 = vrot.lane.b32.xlu1 %v4043_v59, %s3607_s14 }
 0xea7   :  { %3290 = vrot.lane.b32.xlu1 %v4043_v59, %s3611_s23 }
 0xea9   :  { %3280 = vrot.lane.b32.xlu0 %v4043_v59, %s3605_s4 }
 0xeab   :  { %1834 = vrot.lane.b32.xlu1 %v4053_v4, %s3611_s23 }
 0xeac   :  { %v1540_v58 = vpop.xlane.xlu1 %1539 }
 0xead   :  { %1832 = vrot.lane.b32.xlu0 %v4055_v6, %s3611_s23  ;;  %v1537_v55 = vpop.xlane.xlu0 %1536 }
 0xeae   :  { %3353 = vrcp.f32 %v1537_v55 }
 0xeaf   :  { %3355 = vrcp.f32 %v1540_v58 }
 0xeb8   :  { %v3354_v56 = vpop.eup %3353 }
 0xeb9   :  { %v4095_v57 = vmul.f32 %v3354_v56, %v3348_v40  ;;  %v3356_v10 = vpop.eup %3355 }
 0xeba   :  { %v4099_v5 = vmul.f32 %v3356_v10, %v3346_v33 }
 0xebb   :  { %2978 = vmatprep.mubr.msk.f32.mxu0 %vm358_vm3, %v4095_v57 }
 0xf1f   :  { %v1740_v60 = vpop.xlane.xlu1 %1739 }
 0xf20   :  { %v1737_v14 = vpop.xlane.xlu0 %1736 }
 0xf21   :  { %3357 = vrcp.f32 %v1737_v14 }
 0xf22   :  { %3359 = vrcp.f32 %v1740_v60 }
 0xf23   :  { %v3286_v32 = vpop.permute.xlu1 %3285 }
 0xf24   :  { %v3281_v61 = vpop.permute.xlu0 %3280  ;;  %v3288_v63 = vunpack.i.h.bf16 %v3286_v32  ;;  %v3287_v31 = vunpack.i.l.bf16 %v3286_v32 }
 0xf25   :  { %v3283_v0 = vunpack.i.h.bf16 %v3281_v61  ;;  %v3282_v1 = vunpack.i.l.bf16 %v3281_v61 }
 0xf26   :  { %v3152_v11 = vpack.c.bf16 %v3288_v63, %v3287_v31 }
 0xf27   :  { %v3142_v2 = vpack.c.bf16 %v3283_v0, %v3282_v1  ;;  %v3291_v3 = vpop.permute.xlu1 %3290 }
 0xf28   :  { %v3293_v17 = vunpack.i.h.bf16 %v3291_v3  ;;  %v3292_v18 = vunpack.i.l.bf16 %v3291_v3  ;;  %v1833_v24 = vpop.permute.xlu0 %1832 }
 0xf29   :  { %3143 = vmatprep.subr.bf16.mxu0 %v3142_v2 }
 0xf2a   :  { %3145 = vmatpush3.bf16.msra.mxu0 %v3142_v2  ;;  %v3156_v22 = vpack.c.bf16 %v3293_v17, %v3292_v18 }
 0xf2b   :  { %v3358_v7 = vpop.eup %3357  ;;  %3153 = vmatprep.subr.bf16.mxu0 %v3152_v11  ;;  %v1835_v27 = vpop.permute.xlu1 %1834 }
 0xf2c   :  { %v3360_v20 = vpop.eup %3359  ;;  %v4101_v21 = vmul.f32 %v3358_v7, %v3352_v50 }
 0xf2d   :  { %2979 = vmatmul.mubr.msk.f32.vlgmr.msra.gmra.mrb[12].mxu0 %vm358_vm3, %v4099_v5  ;;  %v4107_v23 = vmul.f32 %v3360_v20, %v3350_v49 }
 0xf2e   :  { %3155 = vmatpush3.bf16.msra.mxu0 %v3152_v11  ;;  %2992 = vmatprep.mubr.msk.f32.mxu0 %vm358_vm3, %v4101_v21 }
 0xf2f   :  { %3158 = vmatprep.subr.msk.bf16.mxu0 %vm3872_vm2, %v3156_v22 }
 0xf31   :  { %2993 = vmatmul.mubr.msk.f32.vlgmr.msra.gmra.mrb[14].mxu0 %vm358_vm3, %v4107_v23 }
 0xf32   :  { %2999 = vmatprep.mubr.msk.f32.mxu0 %vm272_vm1, %v1833_v24 }
 0xf37   :  { %3161 = vmatpush3.bf16.xpose.msk.msra.mxu0 %vm3872_vm2, %v3156_v22 }
 0xf3e   :  { %3000 = vmatmul.mubr.msk.f32.vlgmr.msra.gmra.mrb[16].mxu0 %vm272_vm1, %v1835_v27 }
0x1000   :  { %v4117_v28 = vpop.f32.mrb[12].mxu0 }
0x1001   :  { %v4119_v29 = vpop.f32.mrb[13].mxu0 }
0x1004   :  { %v4121_v30 = vpop.f32.mrb[14].mxu0 }
0x1005   :  { %v4123_v35 = vpop.f32.mrb[15].mxu0 }
0x1011   :  { %v3001_v36 = vpop.f32.mrb[16].mxu0 }
0x1012   :  { %v1920_v37 = vadd.f32 %v3001_v36, %v4069_v12  ;;  %v1914_v38 = vpop.f32.mrb[17].mxu0 }
0x1013   :  { %v1915_v34 = vadd.f32 %v1914_v38, %v4071_v16 }
0x1014   :  { %v1926_v33 = vsel %vm358_vm3, %v1920_v37, -inf }
0x1015   :  { %1927 = vmax.xlane.f32.xlu1 %v1926_v33  ;;  %v1923_v40 = vsel %vm358_vm3, %v1915_v34, -inf }
0x1016   :  { %1924 = vmax.xlane.f32.xlu0 %v1923_v40 }
0x1026   :  { %3295 = vrot.lane.b32.xlu1 %v4043_v59, %s3609_s29 }
0x102a   :  { %2032 = vrot.lane.b32.xlu1 %v4055_v6, %s3613_s17 }
0x102e   :  { %2034 = vrot.lane.b32.xlu1 %v4053_v4, %s3613_s17 }
0x10a2   :  { %v1928_v41 = vpop.xlane.xlu1 %1927 }
0x10a3   :  { %v1930_v42 = vsub.f32 %v1920_v37, %v1928_v41  ;;  %v1925_v43 = vpop.xlane.xlu0 %1924 }
0x10a4   :  { %v1929_v44 = vsub.f32 %v1915_v34, %v1925_v43 }
0x10a5   :  { %v1933_v45 = vmul.f32 1.442695, %v1930_v42 }
0x10a6   :  { %v1931_v46 = vmul.f32 1.442695, %v1929_v44  ;;  %v3296_v47 = vpop.permute.xlu1 %3295 }
0x10a7   :  { %3361 = vpow2.f32 %v1933_v45  ;;  %v3298_v48 = vunpack.i.h.bf16 %v3296_v47  ;;  %v3297_v49 = vunpack.i.l.bf16 %v3296_v47 }
0x10a8   :  { %3363 = vpow2.f32 %v1931_v46 }
0x10a9   :  { %v3162_v50 = vpack.c.bf16 %v3298_v48, %v3297_v49  ;;  %v1430_v48 = vld [vmem:[#allocation11] sm:$0xff]  ;;  %v1432_v49 = vld [vmem:[#allocation11 + $0x10] sm:$0xff] }
0x10aa   :  { %v2033_v1 = vpop.permute.xlu1 %2032 }
0x10ab   :  { %3163 = vmatprep.subr.bf16.mxu1 %v3162_v50 }
0x10ac   :  { %3165 = vmatpush3.bf16.msra.mxu1 %v3162_v50 }
0x10ae   :  { %v2035_v2 = vpop.permute.xlu1 %2034 }
0x10b1   :  { %v3362_v52 = vpop.eup %3361 }
0x10b2   :  { %v1938_v6 = vsel %vm358_vm3, %v3362_v52, 0.0  ;;  %v3364_v54 = vpop.eup %3363 }
0x10b3   :  { %1939 = vadd.xlane.f32.xlu0 %v1938_v6  ;;  %v1935_v4 = vsel %vm358_vm3, %v3364_v54, 0.0 }
0x10b7   :  { %1936 = vadd.xlane.f32.xlu0 %v1935_v4 }
0x10cd   :  { %3300 = vrot.lane.b32.xlu0 %v4043_v59, %s3613_s17 }
0x1140   :  { %v1940_v55 = vpop.xlane.xlu0 %1939 }
0x1141   :  { %3365 = vrcp.f32 %v1940_v55 }
0x1144   :  { %v1937_v56 = vpop.xlane.xlu0 %1936 }
0x1145   :  { %3367 = vrcp.f32 %v1937_v56 }
0x1148   :  { %v3301_v58 = vpop.permute.xlu0 %3300 }
0x1149   :  { %v3303_v60 = vunpack.i.h.bf16 %v3301_v58  ;;  %v3302_v14 = vunpack.i.l.bf16 %v3301_v58 }
0x114b   :  { %v3166_v32 = vpack.c.bf16 %v3303_v60, %v3302_v14  ;;  %v3366_v61 = vpop.eup %3365 }
0x114c   :  { %v4143_v0 = vmul.f32 %v3366_v61, %v3362_v52  ;;  %v1433_v52 = vld [vmem:[#allocation11 + $0x18] sm:$0xff] }
0x114d   :  { %3168 = vmatprep.subr.msk.bf16.mxu1 %vm3872_vm2, %v3166_v32  ;;  %v3180_v6 = vpack.c.bf16 %v1433_v52, %v1432_v49  ;;  %v2507_v52 = vld [vmem:[%s4296_s10 + $0x28] sm:$0xff] }
0x114f   :  { %v3368_v63 = vpop.eup %3367 }
0x1150   :  { %v4141_v31 = vmul.f32 %v3368_v63, %v3364_v54 }
0x1152   :  { %3006 = vmatprep.mubr.msk.f32.mxu1 %vm358_vm3, %v4141_v31 }
0x1153   :  { %3007 = vmatmul.mubr.msk.f32.vlgmr.msra.gmra.mrb[16].mxu1 %vm358_vm3, %v4143_v0 }
0x1154   :  { %3171 = vmatpush3.bf16.xpose.msk.msra.mxu1 %vm3872_vm2, %v3166_v32  ;;  %3013 = vmatprep.mubr.msk.f32.mxu1 %vm272_vm1, %v2033_v1 }
0x115b   :  { %3014 = vmatmul.mubr.msk.f32.vlgmr.msra.gmra.mrb[18].mxu1 %vm272_vm1, %v2035_v2 }
0x1226   :  { %v3008_v3 = vpop.f32.mrb[16].mxu1 }
0x1227   :  { %v2023_v10 = vpop.f32.mrb[17].mxu1 }
0x122e   :  { %v3015_v11 = vpop.f32.mrb[18].mxu1 }
0x122f   :  { %v2120_v17 = vadd.f32 %v3015_v11, %v4069_v12  ;;  %v2114_v18 = vpop.f32.mrb[19].mxu1  ;;  %v2744_v11 = vld [vmem:[#allocation14 + $0x4] ss:$0 sm:$0xff] }
0x1230   :  { %v2115_v7 = vadd.f32 %v2114_v18, %v4071_v16 }
0x1231   :  { %v2126_v20 = vsel %vm358_vm3, %v2120_v17, -inf }
0x1232   :  { %2127 = vmax.xlane.f32.xlu1 %v2126_v20  ;;  %v2123_v22 = vsel %vm358_vm3, %v2115_v7, -inf }
0x1233   :  { %2124 = vmax.xlane.f32.xlu0 %v2123_v22 }
0x1243   :  { %3305 = vrot.lane.b32.xlu1 %v4043_v59, %s3612_s13 }
0x1247   :  { %2236 = vrot.lane.b32.xlu1 %v4121_v30, %s3598_s16 }
0x124b   :  { %2242 = vrot.lane.b32.xlu1 %v2023_v10, %s3616_s30 }
0x12bf   :  { %v2128_v19 = vpop.xlane.xlu1 %2127 }
0x12c0   :  { %v2130_v24 = vsub.f32 %v2120_v17, %v2128_v19  ;;  %v2125_v12 = vpop.xlane.xlu0 %2124 }
0x12c1   :  { %v2129_v27 = vsub.f32 %v2115_v7, %v2125_v12 }
0x12c2   :  { %v2133_v36 = vmul.f32 1.442695, %v2130_v24 }
0x12c3   :  { %v2131_v16 = vmul.f32 1.442695, %v2129_v27  ;;  %v3306_v37 = vpop.permute.xlu1 %3305 }
0x12c4   :  { %v3308_v38 = vunpack.i.h.bf16 %v3306_v37  ;;  %v3307_v34 = vunpack.i.l.bf16 %v3306_v37 }
0x12c5   :  { %3369 = vpow2.f32 %v2131_v16 }
0x12c6   :  { %v3172_v33 = vpack.c.bf16 %v3308_v38, %v3307_v34  ;;  %3371 = vpow2.f32 %v2133_v36 }
0x12c7   :  { %v2237_v56 = vpop.permute.xlu1 %2236 }
0x12c8   :  { %3173 = vmatprep.subr.bf16.mxu0 %v3172_v33  ;;  %v2257_v61 = vsel %vm272_vm1, %v4117_v28, %v2237_v56 }
0x12c9   :  { %3175 = vmatpush3.bf16.msra.mxu0 %v3172_v33 }
0x12cb   :  { %v2243_v60 = vpop.permute.xlu1 %2242 }
0x12cf   :  { %v3370_v59 = vpop.eup %3369 }
0x12d0   :  { %v2135_v40 = vsel %vm358_vm3, %v3370_v59, 0.0  ;;  %v3372_v30 = vpop.eup %3371 }
0x12d1   :  { %2136 = vadd.xlane.f32.xlu0 %v2135_v40  ;;  %v2138_v41 = vsel %vm358_vm3, %v3372_v30, 0.0 }
0x12d5   :  { %2139 = vadd.xlane.f32.xlu0 %v2138_v41  ;;  %v2414_v41 = vld [vmem:[#allocation13 + $0x18] sm:$0xff] }
0x12eb   :  { %2234 = vrot.lane.b32.xlu0 %v4123_v35, %s3598_s16  ;;  %v1431_v35 = vld [vmem:[#allocation11 + $0x8] sm:$0xff] }
0x12ec   :  { %v3176_v50 = vpack.c.bf16 %v1431_v35, %v1430_v48  ;;  %v2505_v35 = vld [vmem:[%s4296_s10 + $0x18] sm:$0xff] }
0x12ee   :  { %3177 = vmatprep.subr.bf16.mxu0 %v3176_v50 }
0x12ef   :  { %2244 = vrot.lane.b32.xlu0 %v3008_v3, %s3616_s30 }
0x135e   :  { %v2137_v42 = vpop.xlane.xlu0 %2136 }
0x135f   :  { %3373 = vrcp.f32 %v2137_v42 }
0x1362   :  { %v2140_v43 = vpop.xlane.xlu0 %2139 }
0x1363   :  { %3375 = vrcp.f32 %v2140_v43  ;;  %v2502_v43 = vld [vmem:[%s4296_s10] sm:$0xff] }
0x1366   :  { %v2235_v55 = vpop.permute.xlu0 %2234 }
0x1367   :  { %v2256_v14 = vsel %vm272_vm1, %v4119_v29, %v2235_v55 }
0x1368   :  { %v2258_v1 = vsel %vm358_vm3, %v2256_v14, %v2243_v60 }
0x1369   :  { %v3374_v44 = vpop.eup %3373 }
0x136a   :  { %v4167_v45 = vmul.f32 %v3374_v44, %v3370_v59  ;;  %v2245_v58 = vpop.permute.xlu0 %2244  ;;  %v2412_v59 = vld [vmem:[#allocation13 + $0x8] sm:$0xff] }
0x136b   :  { %v2259_v2 = vsel %vm358_vm3, %v2257_v61, %v2245_v58  ;;  %v2503_v44 = vld [vmem:[%s4296_s10 + $0x8] sm:$0xff] }
0x136c   :  { %3020 = vmatprep.mubr.msk.f32.mxu0 %vm358_vm3, %v4167_v45  ;;  %v3192_v48 = vpack.c.bf16 %v2503_v44, %v2502_v43 }
0x136d   :  { %v3376_v46 = vpop.eup %3375 }
0x136e   :  { %v4171_v47 = vmul.f32 %v3376_v46, %v3372_v30  ;;  %v2413_v30 = vld [vmem:[#allocation13 + $0x10] sm:$0xff] }
0x136f   :  { %v3188_v42 = vpack.c.bf16 %v2414_v41, %v2413_v30  ;;  %v2504_v46 = vld [vmem:[%s4296_s10 + $0x10] sm:$0xff] }
0x1370   :  { %3021 = vmatmul.mubr.msk.f32.vlgmr.msra.gmra.mrb[18].mxu0 %vm358_vm3, %v4171_v47  ;;  %v3196_v49 = vpack.c.bf16 %v2505_v35, %v2504_v46 }
0x1371   :  { %3179 = vmatpush3.bf16.msra.mxu0 %v3176_v50  ;;  %v2506_v50 = vld [vmem:[%s4296_s10 + $0x20] sm:$0xff] }
0x1372   :  { %3181 = vmatprep.subr.bf16.mxu0 %v3180_v6 }
0x1375   :  { %3183 = vmatpush3.bf16.msra.mxu0 %v3180_v6  ;;  %v3200_v6 = vpack.c.bf16 %v2507_v52, %v2506_v50 }
0x1376   :  { %3193 = vmatprep.subr.bf16.mxu0 %v3192_v48 }
0x1443   :  { %v3022_v54 = vpop.f32.mrb[18].mxu0 }
0x1444   :  { %2252 = vrot.lane.b32.xlu0 %v3022_v54, %s3617_s27  ;;  %v2223_v4 = vpop.f32.mrb[19].mxu0 }
0x1445   :  { %2250 = vrot.lane.b32.xlu1 %v2223_v4, %s3617_s27 }
0x14b6   :  { %v2253_v32 = vpop.permute.xlu0 %2252 }
0x14b7   :  { %v2251_v63 = vpop.permute.xlu1 %2250  ;;  %v2261_v10 = vsel %vm1096_vm4, %v2259_v2, %v2253_v32  ;;  %v2747_v32 = vld [vmem:[#allocation14 + $0x9] ss:$0 sm:$0xff]  ;;  %v2748_v2 = vld [vmem:[#allocation14 + $0xa] ss:$0 sm:$0xff] }
0x14b8   :  { %v2260_v3 = vsel %vm1096_vm4, %v2258_v1, %v2251_v63 }
0x14b9   :  { %3031 = vmatprep.mubr.msk.f32.mxu0 %vm176_vm0, %v2260_v3 }
0x14ba   :  { %3032 = vmatmul.mubr.msk.f32.vlgmr.msra.gmra.mrb[20].mxu0 %vm176_vm0, %v2261_v10 }
0x14bb   :  { %3195 = vmatpush3.bf16.msra.mxu0 %v3192_v48 }
0x14bc   :  { %3197 = vmatprep.subr.bf16.mxu0 %v3196_v49 }
0x14bf   :  { %3199 = vmatpush3.bf16.msra.mxu0 %v3196_v49 }
0x14c0   :  { %3201 = vmatprep.subr.bf16.mxu0 %v3200_v6 }
0x14c3   :  { %3203 = vmatpush3.bf16.msra.mxu0 %v3200_v6 }
0x158d   :  { %v3033_v17 = vpop.f32.mrb[20].mxu0 }
0x158e   :  { %v2368_v29 = vadd.f32 %v3033_v17, %v2744_v11  ;;  %v2362_v18 = vpop.f32.mrb[21].mxu0 }
0x158f   :  { %v2363_v7 = vadd.f32 %v2744_v11, %v2362_v18  ;;  %v2509_v18 = vld [vmem:[%s4296_s10 + $0x38] sm:$0xff] }
0x1590   :  { %v2372_v28 = vadd.f32 %v2368_v29, %v4039_v53  ;;  %v2508_v29 = vld [vmem:[%s4296_s10 + $0x30] sm:$0xff]  ;;  %s3618_s10 = smov 32  }
0x1591   :  { %v2371_v20 = vadd.f32 %v2363_v7, %v4035_v51  ;;  %v2411_v51 = vld [vmem:[#allocation13] sm:$0xff]  ;;  %v3204_v7 = vpack.c.bf16 %v2509_v18, %v2508_v29 }
0x1592   :  { %v2376_v22 = vsel %vm176_vm0, %v2372_v28, 0.0  ;;  %v3184_v40 = vpack.c.bf16 %v2412_v59, %v2411_v51 }
0x1593   :  { %2377 = vadd.xlane.f32.xlu0 %v2376_v22  ;;  %v2373_v19 = vsel %vm176_vm0, %v2371_v20, 0.0  ;;  %3205 = vmatprep.subr.bf16.mxu0 %v3204_v7 }
0x1594   :  { %2374 = vadd.xlane.f32.xlu1 %v2373_v19  ;;  %3185 = vmatprep.subr.bf16.mxu1 %v3184_v40 }
0x1595   :  { %3187 = vmatpush3.bf16.msra.mxu1 %v3184_v40  ;;  %3207 = vmatpush3.bf16.msra.mxu0 %v3204_v7 }
0x1596   :  { %3189 = vmatprep.subr.bf16.mxu1 %v3188_v42 }
0x1599   :  { %3191 = vmatpush3.bf16.msra.mxu1 %v3188_v42 }
0x1620   :  { %v2378_v24 = vpop.xlane.xlu0 %2377 }
0x1621   :  { %v2380_v12 = vmul.f32 0.03125, %v2378_v24  ;;  %v2375_v27 = vpop.xlane.xlu1 %2374 }
0x1622   :  { %v2379_v36 = vmul.f32 0.03125, %v2375_v27 }
0x1623   :  { %v2382_v16 = vsub.f32 %v2372_v28, %v2380_v12  ;;  %v2749_v28 = vld [vmem:[#allocation14 + $0x5] ss:$0 sm:$0xff] }
0x1624   :  { %v2381_v37 = vsub.f32 %v2371_v20, %v2379_v36  ;;  %v2752_v36 = vld [vmem:[#allocation14 + $0x6] ss:$0 sm:$0xff] }
0x1625   :  { %v2384_v38 = vmul.f32 %v2382_v16, %v2382_v16 }
0x1626   :  { %v2383_v34 = vmul.f32 %v2381_v37, %v2381_v37 }
0x1627   :  { %v2388_v33 = vsel %vm176_vm0, %v2384_v38, 0.0 }
0x1628   :  { %2389 = vadd.xlane.f32.xlu1 %v2388_v33  ;;  %v2385_v53 = vsel %vm176_vm0, %v2383_v34, 0.0 }
0x1629   :  { %2386 = vadd.xlane.f32.xlu0 %v2385_v53 }
0x16b5   :  { %v2390_v54 = vpop.xlane.xlu1 %2389 }
0x16b6   :  { %v2392_v4 = vmul.f32 0.03125, %v2390_v54  ;;  %v2387_v55 = vpop.xlane.xlu0 %2386 }
0x16b7   :  { %v2391_v56 = vmul.f32 0.03125, %v2387_v55 }
0x16b8   :  { %v2394_v58 = vadd.f32 1e-05, %v2392_v4 }
0x16b9   :  { %v2393_v60 = vadd.f32 1e-05, %v2391_v56 }
0x16ba   :  { %3377 = vrsqrt.f32 %v2394_v58 }
0x16bb   :  { %3379 = vrsqrt.f32 %v2393_v60 }
0x16c4   :  { %v3378_v14 = vpop.eup %3377 }
0x16c5   :  { %v3380_v61 = vpop.eup %3379  ;;  %v2398_v63 = vmul.f32 %v3378_v14, %v2382_v16 }
0x16c6   :  { %v2397_v1 = vmul.f32 %v3380_v61, %v2381_v37 }
0x16c7   :  { %v2404_v3 = vmul.f32 %v2747_v32, %v2398_v63 }
0x16c8   :  { %v2403_v10 = vmul.f32 %v2747_v32, %v2397_v1 }
0x16c9   :  { %v2410_v17 = vadd.f32 %v2748_v2, %v2404_v3  ;;  %v2755_v3 = vld [vmem:[#allocation14 + $0xb] ss:$0 sm:$0xff] }
0x16ca   :  { %v2409_v11 = vadd.f32 %v2748_v2, %v2403_v10 }
0x16cc   :  { %3042 = vmatprep.mubr.msk.f32.mxu1 %vm176_vm0, %v2409_v11 }
0x16cd   :  { %3043 = vmatmul.mubr.msk.f32.vlgmr.msra.gmra.mrb[20].mxu1 %vm176_vm0, %v2410_v17 }
0x17a0   :  { %v3044_v20 = vpop.f32.mrb[20].mxu1 }
0x17a1   :  { %v2497_v22 = vadd.f32 %v3044_v20, %v2749_v28  ;;  %v2491_v19 = vpop.f32.mrb[21].mxu1 }
0x17a2   :  { %v2492_v24 = vadd.f32 %v2749_v28, %v2491_v19 }
0x17a3   :  { %v2501_v27 = vmax.f32 %v2497_v22, 0.0 }
0x17a4   :  { %v2500_v12 = vmax.f32 %v2492_v24, 0.0 }
0x17a6   :  { %3061 = vmatprep.mubr.msk.f32.mxu0 %vm2514_vm5, %v2500_v12 }
0x17a7   :  { %3062 = vmatmul.mubr.msk.f32.vlgmr.msra.gmra.mrb[22].mxu0 %vm2514_vm5, %v2501_v27 }
0x187a   :  { %v3063_v16 = vpop.f32.mrb[22].mxu0 }
0x187b   :  { %v2593_v37 = vadd.f32 %v3063_v16, %v2752_v36  ;;  %v2587_v38 = vpop.f32.mrb[23].mxu0 }
0x187c   :  { %v2588_v34 = vadd.f32 %v2752_v36, %v2587_v38 }
0x187d   :  { %v2597_v33 = vadd.f32 %v2593_v37, %v2410_v17 }
0x187e   :  { %v2596_v53 = vadd.f32 %v2588_v34, %v2409_v11  ;;  %v2756_v11 = vld [vmem:[#allocation14 + $0xc] ss:$0 sm:$0xff] }
0x187f   :  { %v2601_v51 = vsel %vm176_vm0, %v2597_v33, 0.0 }
0x1880   :  { %2602 = vadd.xlane.f32.xlu1 %v2601_v51  ;;  %v2598_v59 = vsel %vm176_vm0, %v2596_v53, 0.0 }
0x1881   :  { %2599 = vadd.xlane.f32.xlu0 %v2598_v59 }
0x1891   :  { %1101 = vrot.lane.b32.xlu1 %v3924_v26, %s3616_s30 }
0x1895   :  { %1105 = vrot.lane.b32.xlu1 %v3958_v15, %s3618_s10 }
0x1897   :  { %1099 = vrot.lane.b32.xlu0 %v3922_v25, %s3616_s30 }
0x1899   :  { %2262 = vrot.lane.b32.xlu1 %v4101_v21, %s3616_s30 }
0x189b   :  { %1107 = vrot.lane.b32.xlu0 %v3960_v62, %s3618_s10 }
0x189d   :  { %1111 = vrot.lane.b32.xlu1 %v3983_v39, %s3614_s18 }
0x189f   :  { %2264 = vrot.lane.b32.xlu0 %v4107_v23, %s3616_s30 }
0x18a1   :  { %2268 = vrot.lane.b32.xlu1 %v4141_v31, %s3618_s10 }
0x18a3   :  { %1113 = vrot.lane.b32.xlu0 %v3985_v13, %s3614_s18 }
0x18a5   :  { %2274 = vrot.lane.b32.xlu1 %v4167_v45, %s3614_s18 }
0x18a7   :  { %2270 = vrot.lane.b32.xlu0 %v4143_v0, %s3618_s10 }
0x18ab   :  { %2276 = vrot.lane.b32.xlu0 %v4171_v47, %s3614_s18 }
0x190d   :  { %v2603_v25 = vpop.xlane.xlu1 %2602 }
0x190e   :  { %v2605_v26 = vmul.f32 0.03125, %v2603_v25  ;;  %v2600_v15 = vpop.xlane.xlu0 %2599 }
0x190f   :  { %v2604_v6 = vmul.f32 0.03125, %v2600_v15 }
0x1910   :  { %v2607_v62 = vsub.f32 %v2597_v33, %v2605_v26 }
0x1911   :  { %v1102_v31 = vpop.permute.xlu1 %1101  ;;  %v2606_v54 = vsub.f32 %v2596_v53, %v2604_v6 }
0x1912   :  { %v1100_v39 = vpop.permute.xlu0 %1099  ;;  %v2609_v21 = vmul.f32 %v2607_v62, %v2607_v62  ;;  %v1118_v0 = vsel %vm358_vm3, %v3914_v9, %v1102_v31 }
0x1913   :  { %v1117_v46 = vsel %vm358_vm3, %v3912_v8, %v1100_v39  ;;  %v2608_v4 = vmul.f32 %v2606_v54, %v2606_v54 }
0x1914   :  { %v2613_v23 = vsel %vm176_vm0, %v2609_v21, 0.0 }
0x1915   :  { %2614 = vadd.xlane.f32.xlu0 %v2613_v23  ;;  %v1106_v30 = vpop.permute.xlu1 %1105  ;;  %v2610_v8 = vsel %vm176_vm0, %v2608_v4, 0.0 }
0x1916   :  { %v1108_v13 = vpop.permute.xlu0 %1107  ;;  %v1119_v48 = vsel %vm176_vm0, %v1117_v46, %v1106_v30 }
0x1917   :  { %v1120_v45 = vsel %vm176_vm0, %v1118_v0, %v1108_v13 }
0x1919   :  { %v2263_v42 = vpop.permute.xlu1 %2262 }
0x191a   :  { %v2265_v40 = vpop.permute.xlu0 %2264  ;;  %v2280_v58 = vsel %vm358_vm3, %v4095_v57, %v2263_v42 }
0x191b   :  { %v2281_v9 = vsel %vm358_vm3, %v4099_v5, %v2265_v40 }
0x191d   :  { %v1112_v44 = vpop.permute.xlu1 %1111 }
0x191e   :  { %v1114_v47 = vpop.permute.xlu0 %1113  ;;  %v1122_v35 = vsel %vm1121_vm6, %v1119_v48, %v1112_v44 }
0x191f   :  { %v1123_v41 = vsel %vm1121_vm6, %v1120_v45, %v1114_v47 }
0x1920   :  { %2640 = vrot.lane.b32.xlu1 %v1123_v41, %s3618_s10 }
0x1921   :  { %v2269_v55 = vpop.permute.xlu1 %2268 }
0x1922   :  { %v2271_v43 = vpop.permute.xlu0 %2270  ;;  %v2282_v60 = vsel %vm176_vm0, %v2280_v58, %v2269_v55 }
0x1923   :  { %v2283_v50 = vsel %vm176_vm0, %v2281_v9, %v2271_v43 }
0x1925   :  { %v2275_v56 = vpop.permute.xlu1 %2274 }
0x1926   :  { %v2277_v49 = vpop.permute.xlu0 %2276  ;;  %v2284_v5 = vsel %vm1121_vm6, %v2282_v60, %v2275_v56 }
0x1927   :  { %v2285_v52 = vsel %vm1121_vm6, %v2283_v50, %v2277_v49 }
0x192b   :  { %2638 = vrot.lane.b32.xlu0 %v1122_v35, %s3618_s10 }
0x192f   :  { %2648 = vrot.lane.b32.xlu0 %v2285_v52, %s3605_s4 }
0x1944   :  { %2611 = vadd.xlane.f32.xlu1 %v2610_v8 }
0x1955   :  { %2646 = vrot.lane.b32.xlu1 %v2284_v5, %s3605_s4  ;;  %s3619_s4 = smov [#allocation16]  }
0x1956   :  { %s2666_s18 = sshll.u32 %s3619_s4, 4  ;;  %s2667_s18 = int_to_ptr.vmem [resolvable:$true] %s2666_s18 }
0x1957   :  { %s3561_s24 = scalar_lea.vmem %s2667_s18, 512  ;;  %p3566_p9 = scmp.lt.s32.totalorder %s2667_s18, %s2667_s18 }
0x1958   :  { %p3562_p8 = scmp.ne.s32.totalorder %s2667_s18, %s3561_s24  ;;  %p3567_p10 = scmp.lt.s32.totalorder %s3561_s24, %s3561_s24 }
0x195a   :  { %p3568_p11 = por %p3567_p10, %p3566_p9 }
0x195c   :  { %p3569_p12 = pnand %p3568_p11, %p3562_p8 }
0x1992   :  { %v2641_v29 = vpop.permute.xlu1 %2640 }
0x19a2   :  { %v2615_v14 = vpop.xlane.xlu0 %2614 }
0x19a3   :  { %v2617_v32 = vmul.f32 0.03125, %v2615_v14 }
0x19a5   :  { %v2619_v61 = vadd.f32 1e-05, %v2617_v32 }
0x19a6   :  { %v2639_v63 = vpop.permute.xlu0 %2638 }
0x19a7   :  { %3381 = vrsqrt.f32 %v2619_v61 }
0x19aa   :  { %v2649_v1 = vpop.permute.xlu0 %2648 }
0x19ab   :  { %2660 = vst.msk [vmem:[#allocation16 + $0x18] sm:$0xff] %vm176_vm0, %v2649_v1 }
0x19b1   :  { %v3382_v2 = vpop.eup %3381 }
0x19b2   :  { %v2623_v10 = vmul.f32 %v3382_v2, %v2607_v62 }
0x19b4   :  { %v2629_v17 = vmul.f32 %v2755_v3, %v2623_v10 }
0x19b6   :  { %v2635_v57 = vadd.f32 %v2756_v11, %v2629_v17 }
0x19b8   :  { %v2653_v18 = vsel %vm176_vm0, %v2635_v57, %v2641_v29 }
0x19b9   :  { %v2656_v7 = vsel %vm2654_vm7, %v2653_v18, %v2649_v1 }
0x19ba   :  { %2659 = vst [vmem:[#allocation16 + $0x10] sm:$0xff] %v2656_v7 }
0x19d1   :  { %v2612_v28 = vpop.xlane.xlu1 %2611 }
0x19d2   :  { %v2616_v20 = vmul.f32 0.03125, %v2612_v28 }
0x19d4   :  { %v2618_v22 = vadd.f32 1e-05, %v2616_v20 }
0x19d5   :  { %v2647_v19 = vpop.permute.xlu1 %2646 }
0x19d6   :  { %3383 = vrsqrt.f32 %v2618_v22  ;;  %2658 = vst.msk [vmem:[#allocation16 + $0x8] sm:$0xff] %vm176_vm0, %v2647_v19 }
0x19e0   :  { %v3384_v24 = vpop.eup %3383 }
0x19e1   :  { %v2622_v12 = vmul.f32 %v3384_v24, %v2606_v54 }
0x19e3   :  { %v2628_v27 = vmul.f32 %v2755_v3, %v2622_v12 }
0x19e5   :  { %v2634_v36 = vadd.f32 %v2756_v11, %v2628_v27 }
0x19e7   :  { %v2652_v16 = vsel %vm176_vm0, %v2634_v36, %v2639_v63 }
0x19e8   :  { %v2655_v37 = vsel %vm2654_vm7, %v2652_v16, %v2647_v19 }
0x19e9   :  { %2657 = vst [vmem:[#allocation16] sm:$0xff] %v2655_v37 }
0x19ea   :  { %3572 = shalt.err (!%p3569_p12)
}
0x19eb   :  { %s3573_s28 = scalar_lea.hbm %s4298_s12, 512 }
0x19ec   :  { %p3574_p13 = scmp.ne.s32.totalorder %s4298_s12, %s3573_s28  ;;  %p3577_p0 = scmp.lt.u32.totalorder %s3573_s28, %s4298_s12 }
0x19ee   :  { %p3579_p1 = pnand %p3577_p0, %p3574_p13 }
0x19f0   :  { %3582 = shalt.err (!%p3579_p1)
}
0x19f1   :  { %s3620_s22 = smov 256  }
0x19f2   :  { %2672 = dma.vmem_to_hbm [thread:$0]  %s2667_s18, 512, %s4298_s12, [#allocation4], %s3620_s22, %s3620_s22, %s3616_s30  }
0x19f3   :  { %3593 = dma.done.wait [#allocation4], 512  }
0x19f4   :  { %3594 = vsyncadd [#allocation4], 4294966784 }
0x19f5   :  { %2676 = vsyncpa [#allocation3], 1 }
0x19f6   :  { %2677 = vsyncpa [#allocation6], 1 }
0x19f7   :  { %2678 = vsyncpa [#allocation9], 1 }
0x19f8   :  { %2679 = vsyncpa [#allocation12], 1 }
0x19f9   :  { %2680 = vsyncpa [#allocation15], 1 }
0x19fa   :  { %2681 = vsyncpa [#allocation4], 1 }

</bundles_post_ra>
